<compile_context>
chip_gen: v5e
topology: v5e:2x2
jax: 0.10.0
libtpu: 0.0.40
codegen_flags: <defaults>
</compile_context>

<pallas_src>
import functools
from typing import List, Tuple

import jax
import jax.numpy as jnp
from jax.experimental import pallas as pl
from jax.experimental.pallas import tpu as pltpu


# ---------------------------------------------------------------------------
# Fused Pallas kernel: full autoencoder forward for one batch tile.
#   refs = [x_ref, w0, b0, w1, b1, ..., w_{L-1}, b_{L-1}, xhat_ref, z_ref]
#   w_i layout: [in, out] bf16 (pre-transposed), b_i layout: [1, out] f32.
# ---------------------------------------------------------------------------
def _ae_fused_kernel(*refs, n_enc: int, n_total: int):
    x_ref = refs[0]
    param_refs = refs[1:1 + 2 * n_total]
    xhat_ref = refs[1 + 2 * n_total]
    z_ref = refs[2 + 2 * n_total]

    h = x_ref[...]                                     # [tb, D_in] bf16
    for li in range(n_total):
        w = param_refs[2 * li][...]                    # [in, out]  bf16 (lane = out)
        b = param_refs[2 * li + 1][...]                # [1, out]   f32
        # MXU matmul, last-dim contraction on both operands, f32 accumulate.
        y = jnp.dot(h, w, preferred_element_type=jnp.float32) + b
        if li == n_total - 1:
            y = jax.nn.sigmoid(y)                      # f32 sigmoid (EUP)
            xhat_ref[...] = y.astype(xhat_ref.dtype)
        else:
            y = jnp.maximum(y, 0.0)                    # f32 ReLU (VPU)
            if li == n_enc - 1:
                z_ref[...] = y.astype(z_ref.dtype)     # latent (full last dim)
            h = y.astype(w.dtype)                      # bf16 feed to next MXU


# ---------------------------------------------------------------------------
# Parameter construction (deterministic, mirrors AE.__init__ / initialize).
# Weights kept in PyTorch nn.Linear layout [out_features, in_features].
# ---------------------------------------------------------------------------
def init_ae_params(key, input_dim: int, hidden_dims: List[int], latent_dim: int):
    feature_dims = [input_dim] + list(hidden_dims) + [latent_dim]

    def make_linear(k, in_f, out_f):
        # nn.init.kaiming_normal_(weight): fan_in mode, leaky_relu(a=0)
        # -> std = sqrt(2 / fan_in); bias zero-filled.
        std = (2.0 / in_f) ** 0.5
        w = jax.random.normal(k, (out_f, in_f), dtype=jnp.float32) * std
        b = jnp.zeros((out_f,), dtype=jnp.float32)
        return w, b

    enc_params = []
    for i in range(len(feature_dims) - 1):
        key, sub = jax.random.split(key)
        enc_params.append(make_linear(sub, feature_dims[i], feature_dims[i + 1]))

    rev = list(reversed(feature_dims))
    dec_params = []
    for i in range(len(rev) - 1):
        key, sub = jax.random.split(key)
        dec_params.append(make_linear(sub, rev[i], rev[i + 1]))

    return enc_params, dec_params


# ---------------------------------------------------------------------------
# One-time parameter prep: transpose to [in, out], cast to bf16; bias -> [1, out].
# Done ONCE (outside the per-step forward), so no transpose/convert per call.
# ---------------------------------------------------------------------------
def prepare_params(params: List[Tuple[jax.Array, jax.Array]],
                   compute_dtype=jnp.bfloat16):
    prepped = []
    for (w, b) in params:
        out_f, _ = w.shape
        prepped.append((jnp.asarray(w.T, dtype=compute_dtype),
                        jnp.asarray(b, dtype=jnp.float32).reshape(1, out_f)))
    return prepped


def _choose_batch_block(n: int) -> int:
    # >=128 rows feeds the 256-wide MXU well on v6e/v7x; tiny batches get a
    # single small (sublane/bf16-friendly) tile.
    if n >= 256:
        return 256
    if n >= 128:
        return 128
    return max(16, ((n + 15) // 16) * 16)


# ---------------------------------------------------------------------------
# Forward pass (matches AE.forward: returns [x_hat, z]) — single pallas_call
# with a batch grid; weights stay VMEM-resident across grid steps.
# ---------------------------------------------------------------------------
def ae_forward(x_nchw: jax.Array,
               prep_enc: List[Tuple[jax.Array, jax.Array]],
               prep_dec: List[Tuple[jax.Array, jax.Array]],
               compute_dtype=jnp.bfloat16):
    n, c, h, w = x_nchw.shape
    d_in = c * h * w
    x = x_nchw.reshape(n, d_in)                       # x.view(N, -1)

    params = list(prep_enc) + list(prep_dec)
    n_enc = len(prep_enc)
    n_total = len(params)
    latent_dim = prep_enc[-1][0].shape[1]

    # Batch tiling: pad to a multiple of the batch block (cheap jnp.pad).
    tb = _choose_batch_block(n)
    n_pad = ((n + tb - 1) // tb) * tb
    x_cast = x.astype(compute_dtype)
    x_pad = jnp.pad(x_cast, ((0, n_pad - n), (0, 0))) if n_pad != n else x_cast
    grid = (n_pad // tb,)

    # Flat inputs: x, then (W^T bf16 [in,out], b f32 [1,out]) per layer.
    flat_inputs = [x_pad]
    in_specs = [pl.BlockSpec((tb, d_in), lambda i: (i, 0))]
    flops = 0
    bytes_accessed = x_pad.size * x_pad.dtype.itemsize
    weight_bytes = 0
    for (wt, bt) in params:
        in_f, out_f = wt.shape
        flat_inputs.append(wt)
        flat_inputs.append(bt)
        # Whole-array resident: constant block index -> fetched once, no re-DMA.
        in_specs.append(pl.BlockSpec((in_f, out_f), lambda i: (0, 0)))
        in_specs.append(pl.BlockSpec((1, out_f), lambda i: (0, 0)))
        flops += 2 * n_pad * in_f * out_f
        weight_bytes += in_f * out_f * wt.dtype.itemsize + out_f * 4
    bytes_accessed += weight_bytes
    bytes_accessed += n_pad * (d_in + latent_dim) * 4           # f32 outputs
    transcendentals = n_pad * d_in                              # final sigmoid

    out_specs = (
        pl.BlockSpec((tb, d_in), lambda i: (i, 0)),
        pl.BlockSpec((tb, latent_dim), lambda i: (i, 0)),
    )

    kernel = functools.partial(_ae_fused_kernel, n_enc=n_enc, n_total=n_total)

    xhat_pad, z_pad = pl.pallas_call(
        kernel,
        out_shape=(
            jax.ShapeDtypeStruct((n_pad, d_in), jnp.float32),
            jax.ShapeDtypeStruct((n_pad, latent_dim), jnp.float32),
        ),
        grid_spec=pltpu.PrefetchScalarGridSpec(
            num_scalar_prefetch=0,
            grid=grid,
            in_specs=in_specs,
            out_specs=out_specs,
        ),
        compiler_params=pltpu.CompilerParams(
            dimension_semantics=("parallel",),        # v7x: shard batch across TCs
            vmem_limit_bytes=32 * 1024 * 1024,        # safe on v5e/v6e/v7x
        ),
        cost_estimate=pl.CostEstimate(
            flops=flops,
            transcendentals=transcendentals,
            bytes_accessed=bytes_accessed,
        ),
    )(*flat_inputs)

    x_hat = xhat_pad[:n].reshape(n, c, h, w)          # x_hat.view([N,C,H,W])
    z = z_pad[:n]
    return [x_hat, z]


# ---------------------------------------------------------------------------
# Pure-JAX reference (same bf16-weight / f32-accumulate recipe) for checking.
# ---------------------------------------------------------------------------
def ae_reference(x_nchw, prep_enc, prep_dec, compute_dtype=jnp.bfloat16):
    n, c, h, w = x_nchw.shape
    params = list(prep_enc) + list(prep_dec)
    n_enc = len(prep_enc)
    hcur = x_nchw.reshape(n, -1).astype(compute_dtype)
    z = None
    for li, (wt, bt) in enumerate(params):
        y = jnp.dot(hcur, wt, preferred_element_type=jnp.float32) + bt
        if li == len(params) - 1:
            y = jax.nn.sigmoid(y)
        else:
            y = jnp.maximum(y, 0.0)
            if li == n_enc - 1:
                z = y
        hcur = y.astype(compute_dtype)
    return y.reshape(n, c, h, w), z


if __name__ == "__main__":
    # Small config consistent with the module's forward.
    N, C, H, W = 2, 4, 16, 16
    cfg = {
        "input_dim": C * H * W,               # 1024
        "hidden_dims": [128, 64],
        "latent_dim": 32,
    }

    key = jax.random.PRNGKey(0)
    key, pkey, xkey = jax.random.split(key, 3)

    enc_params, dec_params = init_ae_params(
        pkey, cfg["input_dim"], cfg["hidden_dims"], cfg["latent_dim"]
    )

    # One-time weight prep (transpose + bf16 cast) — NOT per forward call.
    prep_enc = prepare_params(enc_params)
    prep_dec = prepare_params(dec_params)

    x = jax.random.normal(xkey, (N, C, H, W), dtype=jnp.float32)

    fwd = jax.jit(ae_forward)
    x_hat, z = fwd(x, prep_enc, prep_dec)
    jax.block_until_ready((x_hat, z))

    assert x_hat.shape == (N, C, H, W), x_hat.shape
    assert z.shape == (N, cfg["latent_dim"]), z.shape
    assert bool(jnp.all(jnp.isfinite(x_hat))) and bool(jnp.all(jnp.isfinite(z)))
    # Sigmoid output range sanity check (sigmoid applied in f32 before store).
    assert bool(jnp.all(x_hat >= 0.0)) and bool(jnp.all(x_hat <= 1.0))
    # ReLU latent sanity check.
    assert bool(jnp.all(z >= 0.0))

    # Tolerance check against a pure-JAX reference using the same precision
    # recipe (bf16 operands, f32 accumulation).
    x_hat_ref, z_ref = jax.jit(ae_reference)(x, prep_enc, prep_dec)
    assert bool(jnp.allclose(x_hat, x_hat_ref, atol=2e-2, rtol=2e-2))
    assert bool(jnp.allclose(z, z_ref, atol=2e-2, rtol=2e-2))

    print("KERNEL_OK")
</pallas_src>

<mosaic_0001>
module attributes {stable_mosaic.version = 11 : i64} {
  func.func @_ae_fused_kernel(%arg0: i32, %arg1: memref<16x1024xbf16, #tpu.memory_space<vmem>>, %arg2: memref<1024x128xbf16, #tpu.memory_space<vmem>>, %arg3: memref<1x128xf32, #tpu.memory_space<vmem>>, %arg4: memref<128x64xbf16, #tpu.memory_space<vmem>>, %arg5: memref<1x64xf32, #tpu.memory_space<vmem>>, %arg6: memref<64x32xbf16, #tpu.memory_space<vmem>>, %arg7: memref<1x32xf32, #tpu.memory_space<vmem>>, %arg8: memref<32x64xbf16, #tpu.memory_space<vmem>>, %arg9: memref<1x64xf32, #tpu.memory_space<vmem>>, %arg10: memref<64x128xbf16, #tpu.memory_space<vmem>>, %arg11: memref<1x128xf32, #tpu.memory_space<vmem>>, %arg12: memref<128x1024xbf16, #tpu.memory_space<vmem>>, %arg13: memref<1x1024xf32, #tpu.memory_space<vmem>>, %arg14: memref<16x1024xf32, #tpu.memory_space<vmem>>, %arg15: memref<16x32xf32, #tpu.memory_space<vmem>>) attributes {dimension_semantics = [#tpu.dimension_semantics<parallel>], iteration_bounds = array<i64: 1>, scalar_prefetch = 0 : i64, scratch_operands = 0 : i64, tpu.core_type = #tpu.core_type<tc>, window_params = [{transform_indices = @transform_0, window_bounds = array<i64: 16, 1024>}, {pipeline_mode = #tpu.pipeline_mode<synchronous>, transform_indices = @transform_1, window_bounds = array<i64: 1024, 128>}, {pipeline_mode = #tpu.pipeline_mode<synchronous>, transform_indices = @transform_2, window_bounds = array<i64: 1, 128>}, {pipeline_mode = #tpu.pipeline_mode<synchronous>, transform_indices = @transform_3, window_bounds = array<i64: 128, 64>}, {pipeline_mode = #tpu.pipeline_mode<synchronous>, transform_indices = @transform_4, window_bounds = array<i64: 1, 64>}, {pipeline_mode = #tpu.pipeline_mode<synchronous>, transform_indices = @transform_5, window_bounds = array<i64: 64, 32>}, {pipeline_mode = #tpu.pipeline_mode<synchronous>, transform_indices = @transform_6, window_bounds = array<i64: 1, 32>}, {pipeline_mode = #tpu.pipeline_mode<synchronous>, transform_indices = @transform_7, window_bounds = array<i64: 32, 64>}, {pipeline_mode = #tpu.pipeline_mode<synchronous>, transform_indices = @transform_8, window_bounds = array<i64: 1, 64>}, {pipeline_mode = #tpu.pipeline_mode<synchronous>, transform_indices = @transform_9, window_bounds = array<i64: 64, 128>}, {pipeline_mode = #tpu.pipeline_mode<synchronous>, transform_indices = @transform_10, window_bounds = array<i64: 1, 128>}, {pipeline_mode = #tpu.pipeline_mode<synchronous>, transform_indices = @transform_11, window_bounds = array<i64: 128, 1024>}, {pipeline_mode = #tpu.pipeline_mode<synchronous>, transform_indices = @transform_12, window_bounds = array<i64: 1, 1024>}, {transform_indices = @transform_13, window_bounds = array<i64: 16, 1024>}, {transform_indices = @transform_14, window_bounds = array<i64: 16, 32>}]} {
    %c0 = arith.constant 0 : index
    %c0_0 = arith.constant 0 : index
    %0 = vector.load %arg1[%c0, %c0_0] : memref<16x1024xbf16, #tpu.memory_space<vmem>>, vector<16x1024xbf16>
    %c0_1 = arith.constant 0 : index
    %c0_2 = arith.constant 0 : index
    %1 = vector.load %arg2[%c0_1, %c0_2] : memref<1024x128xbf16, #tpu.memory_space<vmem>>, vector<1024x128xbf16>
    %c0_3 = arith.constant 0 : index
    %c0_4 = arith.constant 0 : index
    %2 = vector.load %arg3[%c0_3, %c0_4] : memref<1x128xf32, #tpu.memory_space<vmem>>, vector<1x128xf32>
    %cst = arith.constant dense<0.000000e+00> : vector<16x128xf32>
    %3 = tpu.matmul %0, %1, %cst {dimension_numbers = #tpu.dot_dimension_numbers<[1], [0], [0], [1], [0, 0, 1, 1], [], []>} : vector<16x1024xbf16>, vector<1024x128xbf16>, vector<16x128xf32> -> vector<16x128xf32>
    %4 = vector.broadcast %2 : vector<1x128xf32> to vector<16x128xf32>
    %5 = arith.addf %3, %4 : vector<16x128xf32>
    %cst_5 = arith.constant 0.000000e+00 : f32
    %6 = vector.broadcast %cst_5 : f32 to vector<16x128xf32>
    %7 = arith.maximumf %5, %6 : vector<16x128xf32>
    %8 = arith.truncf %7 : vector<16x128xf32> to vector<16x128xbf16>
    %c0_6 = arith.constant 0 : index
    %c0_7 = arith.constant 0 : index
    %9 = vector.load %arg4[%c0_6, %c0_7] : memref<128x64xbf16, #tpu.memory_space<vmem>>, vector<128x64xbf16>
    %c0_8 = arith.constant 0 : index
    %c0_9 = arith.constant 0 : index
    %10 = vector.load %arg5[%c0_8, %c0_9] : memref<1x64xf32, #tpu.memory_space<vmem>>, vector<1x64xf32>
    %cst_10 = arith.constant dense<0.000000e+00> : vector<16x64xf32>
    %11 = tpu.matmul %8, %9, %cst_10 {dimension_numbers = #tpu.dot_dimension_numbers<[1], [0], [0], [1], [0, 0, 1, 1], [], []>} : vector<16x128xbf16>, vector<128x64xbf16>, vector<16x64xf32> -> vector<16x64xf32>
    %12 = vector.broadcast %10 : vector<1x64xf32> to vector<16x64xf32>
    %13 = arith.addf %11, %12 : vector<16x64xf32>
    %cst_11 = arith.constant 0.000000e+00 : f32
    %14 = vector.broadcast %cst_11 : f32 to vector<16x64xf32>
    %15 = arith.maximumf %13, %14 : vector<16x64xf32>
    %16 = arith.truncf %15 : vector<16x64xf32> to vector<16x64xbf16>
    %c0_12 = arith.constant 0 : index
    %c0_13 = arith.constant 0 : index
    %17 = vector.load %arg6[%c0_12, %c0_13] : memref<64x32xbf16, #tpu.memory_space<vmem>>, vector<64x32xbf16>
    %c0_14 = arith.constant 0 : index
    %c0_15 = arith.constant 0 : index
    %18 = vector.load %arg7[%c0_14, %c0_15] : memref<1x32xf32, #tpu.memory_space<vmem>>, vector<1x32xf32>
    %cst_16 = arith.constant dense<0.000000e+00> : vector<16x32xf32>
    %19 = tpu.matmul %16, %17, %cst_16 {dimension_numbers = #tpu.dot_dimension_numbers<[1], [0], [0], [1], [0, 0, 1, 1], [], []>} : vector<16x64xbf16>, vector<64x32xbf16>, vector<16x32xf32> -> vector<16x32xf32>
    %20 = vector.broadcast %18 : vector<1x32xf32> to vector<16x32xf32>
    %21 = arith.addf %19, %20 : vector<16x32xf32>
    %cst_17 = arith.constant 0.000000e+00 : f32
    %22 = vector.broadcast %cst_17 : f32 to vector<16x32xf32>
    %23 = arith.maximumf %21, %22 : vector<16x32xf32>
    %c0_18 = arith.constant 0 : index
    %c0_19 = arith.constant 0 : index
    %24 = vector.load %arg15[%c0_18, %c0_19] : memref<16x32xf32, #tpu.memory_space<vmem>>, vector<16x32xf32>
    tpu.vector_store %arg15[%c0_18, %c0_19], %23 {strides = array<i32>} : memref<16x32xf32, #tpu.memory_space<vmem>>, vector<16x32xf32>,
    %25 = arith.truncf %23 : vector<16x32xf32> to vector<16x32xbf16>
    %c0_20 = arith.constant 0 : index
    %c0_21 = arith.constant 0 : index
    %26 = vector.load %arg8[%c0_20, %c0_21] : memref<32x64xbf16, #tpu.memory_space<vmem>>, vector<32x64xbf16>
    %c0_22 = arith.constant 0 : index
    %c0_23 = arith.constant 0 : index
    %27 = vector.load %arg9[%c0_22, %c0_23] : memref<1x64xf32, #tpu.memory_space<vmem>>, vector<1x64xf32>
    %cst_24 = arith.constant dense<0.000000e+00> : vector<16x64xf32>
    %28 = tpu.matmul %25, %26, %cst_24 {dimension_numbers = #tpu.dot_dimension_numbers<[1], [0], [0], [1], [0, 0, 1, 1], [], []>} : vector<16x32xbf16>, vector<32x64xbf16>, vector<16x64xf32> -> vector<16x64xf32>
    %29 = vector.broadcast %27 : vector<1x64xf32> to vector<16x64xf32>
    %30 = arith.addf %28, %29 : vector<16x64xf32>
    %cst_25 = arith.constant 0.000000e+00 : f32
    %31 = vector.broadcast %cst_25 : f32 to vector<16x64xf32>
    %32 = arith.maximumf %30, %31 : vector<16x64xf32>
    %33 = arith.truncf %32 : vector<16x64xf32> to vector<16x64xbf16>
    %c0_26 = arith.constant 0 : index
    %c0_27 = arith.constant 0 : index
    %34 = vector.load %arg10[%c0_26, %c0_27] : memref<64x128xbf16, #tpu.memory_space<vmem>>, vector<64x128xbf16>
    %c0_28 = arith.constant 0 : index
    %c0_29 = arith.constant 0 : index
    %35 = vector.load %arg11[%c0_28, %c0_29] : memref<1x128xf32, #tpu.memory_space<vmem>>, vector<1x128xf32>
    %cst_30 = arith.constant dense<0.000000e+00> : vector<16x128xf32>
    %36 = tpu.matmul %33, %34, %cst_30 {dimension_numbers = #tpu.dot_dimension_numbers<[1], [0], [0], [1], [0, 0, 1, 1], [], []>} : vector<16x64xbf16>, vector<64x128xbf16>, vector<16x128xf32> -> vector<16x128xf32>
    %37 = vector.broadcast %35 : vector<1x128xf32> to vector<16x128xf32>
    %38 = arith.addf %36, %37 : vector<16x128xf32>
    %cst_31 = arith.constant 0.000000e+00 : f32
    %39 = vector.broadcast %cst_31 : f32 to vector<16x128xf32>
    %40 = arith.maximumf %38, %39 : vector<16x128xf32>
    %41 = arith.truncf %40 : vector<16x128xf32> to vector<16x128xbf16>
    %c0_32 = arith.constant 0 : index
    %c0_33 = arith.constant 0 : index
    %42 = vector.load %arg12[%c0_32, %c0_33] : memref<128x1024xbf16, #tpu.memory_space<vmem>>, vector<128x1024xbf16>
    %c0_34 = arith.constant 0 : index
    %c0_35 = arith.constant 0 : index
    %43 = vector.load %arg13[%c0_34, %c0_35] : memref<1x1024xf32, #tpu.memory_space<vmem>>, vector<1x1024xf32>
    %cst_36 = arith.constant dense<0.000000e+00> : vector<16x1024xf32>
    %44 = tpu.matmul %41, %42, %cst_36 {dimension_numbers = #tpu.dot_dimension_numbers<[1], [0], [0], [1], [0, 0, 1, 1], [], []>} : vector<16x128xbf16>, vector<128x1024xbf16>, vector<16x1024xf32> -> vector<16x1024xf32>
    %45 = vector.broadcast %43 : vector<1x1024xf32> to vector<16x1024xf32>
    %46 = arith.addf %44, %45 : vector<16x1024xf32>
    %47 = arith.negf %46 : vector<16x1024xf32>
    %48 = math.exp %47 : vector<16x1024xf32>
    %cst_37 = arith.constant 1.000000e+00 : f32
    %49 = vector.broadcast %cst_37 : f32 to vector<16x1024xf32>
    %50 = arith.addf %49, %48 : vector<16x1024xf32>
    %51 = arith.divf %49, %50 : vector<16x1024xf32>
    %c0_38 = arith.constant 0 : index
    %c0_39 = arith.constant 0 : index
    %52 = vector.load %arg14[%c0_38, %c0_39] : memref<16x1024xf32, #tpu.memory_space<vmem>>, vector<16x1024xf32>
    tpu.vector_store %arg14[%c0_38, %c0_39], %51 {strides = array<i32>} : memref<16x1024xf32, #tpu.memory_space<vmem>>, vector<16x1024xf32>,
    return
  }
  func.func @transform_0(%arg0: i32) -> (i32, i32) {
    %c0_i32 = arith.constant 0 : i32
    %c0_i32_0 = arith.constant 0 : i32
    return %arg0, %c0_i32 : i32, i32
  }
  func.func @transform_1(%arg0: i32) -> (i32, i32) {
    %c0_i32 = arith.constant 0 : i32
    %c0_i32_0 = arith.constant 0 : i32
    %c0_i32_1 = arith.constant 0 : i32
    return %c0_i32, %c0_i32_0 : i32, i32
  }
  func.func @transform_2(%arg0: i32) -> (i32, i32) {
    %c0_i32 = arith.constant 0 : i32
    %c0_i32_0 = arith.constant 0 : i32
    %c0_i32_1 = arith.constant 0 : i32
    return %c0_i32, %c0_i32_0 : i32, i32
  }
  func.func @transform_3(%arg0: i32) -> (i32, i32) {
    %c0_i32 = arith.constant 0 : i32
    %c0_i32_0 = arith.constant 0 : i32
    %c0_i32_1 = arith.constant 0 : i32
    return %c0_i32, %c0_i32_0 : i32, i32
  }
  func.func @transform_4(%arg0: i32) -> (i32, i32) {
    %c0_i32 = arith.constant 0 : i32
    %c0_i32_0 = arith.constant 0 : i32
    %c0_i32_1 = arith.constant 0 : i32
    return %c0_i32, %c0_i32_0 : i32, i32
  }
  func.func @transform_5(%arg0: i32) -> (i32, i32) {
    %c0_i32 = arith.constant 0 : i32
    %c0_i32_0 = arith.constant 0 : i32
    %c0_i32_1 = arith.constant 0 : i32
    return %c0_i32, %c0_i32_0 : i32, i32
  }
  func.func @transform_6(%arg0: i32) -> (i32, i32) {
    %c0_i32 = arith.constant 0 : i32
    %c0_i32_0 = arith.constant 0 : i32
    %c0_i32_1 = arith.constant 0 : i32
    return %c0_i32, %c0_i32_0 : i32, i32
  }
  func.func @transform_7(%arg0: i32) -> (i32, i32) {
    %c0_i32 = arith.constant 0 : i32
    %c0_i32_0 = arith.constant 0 : i32
    %c0_i32_1 = arith.constant 0 : i32
    return %c0_i32, %c0_i32_0 : i32, i32
  }
  func.func @transform_8(%arg0: i32) -> (i32, i32) {
    %c0_i32 = arith.constant 0 : i32
    %c0_i32_0 = arith.constant 0 : i32
    %c0_i32_1 = arith.constant 0 : i32
    return %c0_i32, %c0_i32_0 : i32, i32
  }
  func.func @transform_9(%arg0: i32) -> (i32, i32) {
    %c0_i32 = arith.constant 0 : i32
    %c0_i32_0 = arith.constant 0 : i32
    %c0_i32_1 = arith.constant 0 : i32
    return %c0_i32, %c0_i32_0 : i32, i32
  }
  func.func @transform_10(%arg0: i32) -> (i32, i32) {
    %c0_i32 = arith.constant 0 : i32
    %c0_i32_0 = arith.constant 0 : i32
    %c0_i32_1 = arith.constant 0 : i32
    return %c0_i32, %c0_i32_0 : i32, i32
  }
  func.func @transform_11(%arg0: i32) -> (i32, i32) {
    %c0_i32 = arith.constant 0 : i32
    %c0_i32_0 = arith.constant 0 : i32
    %c0_i32_1 = arith.constant 0 : i32
    return %c0_i32, %c0_i32_0 : i32, i32
  }
  func.func @transform_12(%arg0: i32) -> (i32, i32) {
    %c0_i32 = arith.constant 0 : i32
    %c0_i32_0 = arith.constant 0 : i32
    %c0_i32_1 = arith.constant 0 : i32
    return %c0_i32, %c0_i32_0 : i32, i32
  }
  func.func @transform_13(%arg0: i32) -> (i32, i32) {
    %c0_i32 = arith.constant 0 : i32
    %c0_i32_0 = arith.constant 0 : i32
    return %arg0, %c0_i32 : i32, i32
  }
  func.func @transform_14(%arg0: i32) -> (i32, i32) {
    %c0_i32 = arith.constant 0 : i32
    %c0_i32_0 = arith.constant 0 : i32
    return %arg0, %c0_i32 : i32, i32
  }
}

</mosaic_0001>

<bundles_post_ra>
// kernel: ae_forward.1
= control target key start
LH: loop header
LB: loop body
LE: loop exit
PB: predicated region body
PF: predicated region fallthrough
CT: control target
= control target key end

     0   :  { %20 = vsyncpa [#allocation3], 0  ;;  %s3244_s0 = inlined_call_operand.vmem [shape: bf16[16,1024], index: 0, kind: input, shape index: {}]   ;;  %s3245_s1 = inlined_call_operand.hbm [shape: bf16[1024,128], index: 1, kind: input, shape index: {}]   ;;  %s3246_s2 = inlined_call_operand.vmem [shape: f32[1,128], index: 2, kind: input, shape index: {}]   ;;  %s3247_s3 = inlined_call_operand.vmem [shape: bf16[128,64], index: 3, kind: input, shape index: {}]   ;;  %s3248_s4 = inlined_call_operand.vmem [shape: f32[1,64], index: 4, kind: input, shape index: {}]   ;;  %s3249_s5 = inlined_call_operand.vmem [shape: bf16[64,32], index: 5, kind: input, shape index: {}]   ;;  %s3250_s6 = inlined_call_operand.vmem [shape: f32[1,32], index: 6, kind: input, shape index: {}]   ;;  %s3251_s7 = inlined_call_operand.vmem [shape: bf16[32,64], index: 7, kind: input, shape index: {}]   ;;  %s3252_s8 = inlined_call_operand.vmem [shape: f32[1,64], index: 8, kind: input, shape index: {}]   ;;  %s3253_s9 = inlined_call_operand.vmem [shape: bf16[64,128], index: 9, kind: input, shape index: {}]   ;;  %s3254_s10 = inlined_call_operand.vmem [shape: f32[1,128], index: 10, kind: input, shape index: {}]   ;;  %s3255_s11 = inlined_call_operand.hbm [shape: bf16[128,1024], index: 11, kind: input, shape index: {}]   ;;  %s3256_s12 = inlined_call_operand.vmem [shape: f32[1,1024], index: 12, kind: input, shape index: {}]   ;;  %s3257_s13 = inlined_call_operand.vmem [shape: f32[16,1024], index: 13, kind: output, shape index: {0}]   ;;  %s3258_s14 = inlined_call_operand.vmem [shape: f32[16,32], index: 14, kind: output, shape index: {1}]  }
   0x1   :  { %s28_s15 = sshll.u32 %s3245_s1, 4  ;;  %s29_s15 = int_to_ptr.hbm [resolvable:$true] %s28_s15 }
   0x2   :  { %21 = vsyncpa [#allocation5], 0  ;;  %s2759_s16 = smov [#allocation2]   ;;  %s59_s20 = sshll.u32 %s3255_s11, 4  ;;  %s60_s20 = int_to_ptr.hbm [resolvable:$true] %s59_s20 }
   0x3   :  { %s30_s17 = sshll.u32 %s2759_s16, 4  ;;  %s2760_s21 = smov 64   ;;  %s31_s17 = int_to_ptr.vmem [resolvable:$true] %s30_s17 }
   0x4   :  { %s2761_s22 = smov 4   ;;  %s2762_s23 = smov [#allocation4]  }
   0x5   :  { %36 = dma.hbm_to_vmem [thread:$0]  %s29_s15, 8192, %s31_s17, [#allocation3], %s2760_s21, %s2760_s21, %s2761_s22  }
   0x6   :  { %s61_s24 = sshll.u32 %s2762_s23, 4  ;;  %s2763_s25 = smov 512   ;;  %s62_s24 = int_to_ptr.vmem [resolvable:$true] %s61_s24 }
   0x7   :  { %s2764_s26 = smov 32  }
   0x8   :  { %67 = dma.hbm_to_vmem [thread:$0]  %s60_s20, 8192, %s62_s24, [#allocation5], %s2763_s25, %s2763_s25, %s2764_s26  }
   0x9   :  { %2755 = dma.done.wait [#allocation3], 8192  }
   0xa   :  { %2756 = vsyncadd [#allocation3], 4294959104 }
   0xb   :  { %2757 = dma.done.wait [#allocation5], 8192  }
   0xc   :  { %2758 = vsyncadd [#allocation5], 4294959104  ;;  %v2493_v0 = vld [vmem:[#allocation2 + $0x38] sm:$0xff]  ;;  %v2492_v4 = vld [vmem:[#allocation2 + $0x30] sm:$0xff]  ;;  %vm879_vm0 = vcmask 523264   ;;  %vm899_vm1 = vcmask 261120  }
   0xd   :  { %v2501_v1 = vld [vmem:[#allocation2 + $0x78] sm:$0xff]  ;;  %643 = vmatpush.bf16.msra.mxu0 %v2493_v0  ;;  %v2500_v5 = vld [vmem:[#allocation2 + $0x70] sm:$0xff]  ;;  %v2491_v8 = vld [vmem:[#allocation2 + $0x28] sm:$0xff] }
   0xe   :  { %v2509_v2 = vld [vmem:[#allocation2 + $0xb8] sm:$0xff]  ;;  %657 = vmatpush.bf16.msra.mxu1 %v2501_v1  ;;  %v2508_v6 = vld [vmem:[#allocation2 + $0xb0] sm:$0xff]  ;;  %v2499_v9 = vld [vmem:[#allocation2 + $0x68] sm:$0xff] }
   0xf   :  { %v2517_v3 = vld [vmem:[#allocation2 + $0xf8] sm:$0xff]  ;;  %671 = vmatpush.bf16.msra.mxu2 %v2509_v2  ;;  %v2516_v7 = vld [vmem:[#allocation2 + $0xf0] sm:$0xff]  ;;  %v2507_v10 = vld [vmem:[#allocation2 + $0xa8] sm:$0xff] }
  0x10   :  { %685 = vmatpush.bf16.msra.mxu3 %v2517_v3  ;;  %v2515_v11 = vld [vmem:[#allocation2 + $0xe8] sm:$0xff]  ;;  %v2490_v12 = vld [vmem:[#allocation2 + $0x20] sm:$0xff]  ;;  %v2489_v16 = vld [vmem:[#allocation2 + $0x18] sm:$0xff] }
  0x11   :  { %644 = vmatpush.bf16.msra.mxu0 %v2492_v4  ;;  %v2498_v13 = vld [vmem:[#allocation2 + $0x60] sm:$0xff]  ;;  %v2497_v17 = vld [vmem:[#allocation2 + $0x58] sm:$0xff]  ;;  %v2488_v20 = vld [vmem:[#allocation2 + $0x10] sm:$0xff] }
  0x12   :  { %658 = vmatpush.bf16.msra.mxu1 %v2500_v5  ;;  %v2506_v14 = vld [vmem:[#allocation2 + $0xa0] sm:$0xff]  ;;  %v2505_v18 = vld [vmem:[#allocation2 + $0x98] sm:$0xff]  ;;  %v2496_v21 = vld [vmem:[#allocation2 + $0x50] sm:$0xff] }
  0x13   :  { %672 = vmatpush.bf16.msra.mxu2 %v2508_v6  ;;  %v2514_v15 = vld [vmem:[#allocation2 + $0xe0] sm:$0xff]  ;;  %v2513_v19 = vld [vmem:[#allocation2 + $0xd8] sm:$0xff]  ;;  %v2504_v22 = vld [vmem:[#allocation2 + $0x90] sm:$0xff] }
  0x14   :  { %686 = vmatpush.bf16.msra.mxu3 %v2516_v7  ;;  %v2512_v23 = vld [vmem:[#allocation2 + $0xd0] sm:$0xff]  ;;  %v2487_v24 = vld [vmem:[#allocation2 + $0x8] sm:$0xff]  ;;  %v2486_v28 = vld [vmem:[#allocation2] sm:$0xff] }
  0x15   :  { %645 = vmatpush.bf16.msra.mxu0 %v2491_v8  ;;  %v2495_v25 = vld [vmem:[#allocation2 + $0x48] sm:$0xff]  ;;  %v2494_v29 = vld [vmem:[#allocation2 + $0x40] sm:$0xff]  ;;  %v2525_v32 = vld [vmem:[#allocation2 + $0x138] sm:$0xff] }
  0x16   :  { %659 = vmatpush.bf16.msra.mxu1 %v2499_v9  ;;  %v2503_v26 = vld [vmem:[#allocation2 + $0x88] sm:$0xff]  ;;  %v2502_v30 = vld [vmem:[#allocation2 + $0x80] sm:$0xff]  ;;  %v2533_v33 = vld [vmem:[#allocation2 + $0x178] sm:$0xff] }
  0x17   :  { %673 = vmatpush.bf16.msra.mxu2 %v2507_v10  ;;  %v2511_v27 = vld [vmem:[#allocation2 + $0xc8] sm:$0xff]  ;;  %v2510_v31 = vld [vmem:[#allocation2 + $0xc0] sm:$0xff]  ;;  %v2541_v42 = vld [vmem:[#allocation2 + $0x1b8] sm:$0xff] }
  0x18   :  { %687 = vmatpush.bf16.msra.mxu3 %v2515_v11  ;;  %v1853_v34 = vld [vmem:[%s3244_s0 + $0x8] sm:$0xf]  ;;  %v1845_v36 = vld [vmem:[%s3244_s0] sm:$0xf]  ;;  %v2479_v38 = vld [vmem:[%s3244_s0 + $0xc] sm:$0xf] }
  0x19   :  { %646 = vmatpush.bf16.msra.mxu0 %v2490_v12  ;;  %v2483_v35 = vld [vmem:[%s3244_s0 + $0x24] sm:$0xf0]  ;;  %v2482_v37 = vld [vmem:[%s3244_s0 + $0x1c] sm:$0xf0]  ;;  %v1855_v39 = vld [vmem:[%s3244_s0 + $0x28] sm:$0xf0] }
  0x1a   :  { %660 = vmatpush.bf16.msra.mxu1 %v2498_v13  ;;  %v2478_v40 = vld [vmem:[%s3244_s0 + $0x4] sm:$0xf]  ;;  %v2549_v43 = vld [vmem:[#allocation2 + $0x1f8] sm:$0xff]  ;;  %v1854_v44 = vor.u32 %v2483_v35, %v1853_v34  ;;  %v1846_v45 = vor.u32 %v2482_v37, %v1845_v36  ;;  %v1858_v46 = vor.u32 %v2479_v38, %v1855_v39  ;;  %v2524_v48 = vld [vmem:[#allocation2 + $0x130] sm:$0xff] }
  0x1b   :  { %674 = vmatpush.bf16.msra.mxu2 %v2506_v14  ;;  %v1847_v41 = vld [vmem:[%s3244_s0 + $0x20] sm:$0xf0]  ;;  %v2532_v49 = vld [vmem:[#allocation2 + $0x170] sm:$0xff]  ;;  %v2523_v52 = vld [vmem:[#allocation2 + $0x128] sm:$0xff] }
  0x1c   :  { %688 = vmatpush.bf16.msra.mxu3 %v2514_v15  ;;  %v1850_v47 = vor.u32 %v2478_v40, %v1847_v41  ;;  %v2540_v50 = vld [vmem:[#allocation2 + $0x1b0] sm:$0xff]  ;;  %v2531_v53 = vld [vmem:[#allocation2 + $0x168] sm:$0xff]  ;;  %v2522_v56 = vld [vmem:[#allocation2 + $0x120] sm:$0xff] }
  0x1d   :  { %647 = vmatpush.bf16.msra.mxu0 %v2489_v16  ;;  %v2548_v51 = vld [vmem:[#allocation2 + $0x1f0] sm:$0xff]  ;;  %v2539_v54 = vld [vmem:[#allocation2 + $0x1a8] sm:$0xff]  ;;  %v2530_v57 = vld [vmem:[#allocation2 + $0x160] sm:$0xff] }
  0x1e   :  { %661 = vmatpush.bf16.msra.mxu1 %v2497_v17  ;;  %v2547_v55 = vld [vmem:[#allocation2 + $0x1e8] sm:$0xff]  ;;  %v2538_v58 = vld [vmem:[#allocation2 + $0x1a0] sm:$0xff]  ;;  %v2521_v60 = vld [vmem:[#allocation2 + $0x118] sm:$0xff] }
  0x1f   :  { %675 = vmatpush.bf16.msra.mxu2 %v2505_v18  ;;  %v2546_v59 = vld [vmem:[#allocation2 + $0x1e0] sm:$0xff]  ;;  %v2529_v61 = vld [vmem:[#allocation2 + $0x158] sm:$0xff]  ;;  %v2520_v0 = vld [vmem:[#allocation2 + $0x110] sm:$0xff] }
  0x20   :  { %689 = vmatpush.bf16.msra.mxu3 %v2513_v19  ;;  %v2537_v62 = vld [vmem:[#allocation2 + $0x198] sm:$0xff]  ;;  %v2528_v1 = vld [vmem:[#allocation2 + $0x150] sm:$0xff]  ;;  %v2519_v4 = vld [vmem:[#allocation2 + $0x108] sm:$0xff] }
  0x21   :  { %648 = vmatpush.bf16.msra.mxu0 %v2488_v20  ;;  %v2545_v63 = vld [vmem:[#allocation2 + $0x1d8] sm:$0xff]  ;;  %v2536_v2 = vld [vmem:[#allocation2 + $0x190] sm:$0xff]  ;;  %v2527_v5 = vld [vmem:[#allocation2 + $0x148] sm:$0xff] }
  0x22   :  { %662 = vmatpush.bf16.msra.mxu1 %v2496_v21  ;;  %v2544_v3 = vld [vmem:[#allocation2 + $0x1d0] sm:$0xff]  ;;  %v2535_v6 = vld [vmem:[#allocation2 + $0x188] sm:$0xff]  ;;  %v2518_v8 = vld [vmem:[#allocation2 + $0x100] sm:$0xff] }
  0x23   :  { %676 = vmatpush.bf16.msra.mxu2 %v2504_v22  ;;  %v2543_v7 = vld [vmem:[#allocation2 + $0x1c8] sm:$0xff]  ;;  %v2526_v9 = vld [vmem:[#allocation2 + $0x140] sm:$0xff]  ;;  %v1861_v12 = vld [vmem:[%s3244_s0 + $0x10] sm:$0xf] }
  0x24   :  { %690 = vmatpush.bf16.msra.mxu3 %v2512_v23  ;;  %v2534_v10 = vld [vmem:[#allocation2 + $0x180] sm:$0xff]  ;;  %v2484_v13 = vld [vmem:[%s3244_s0 + $0x2c] sm:$0xf0]  ;;  %v2480_v14 = vld [vmem:[%s3244_s0 + $0x14] sm:$0xf] }
  0x25   :  { %649 = vmatpush.bf16.msra.mxu0 %v2487_v24  ;;  %v2542_v11 = vld [vmem:[#allocation2 + $0x1c0] sm:$0xff]  ;;  %v1863_v15 = vld [vmem:[%s3244_s0 + $0x30] sm:$0xf0]  ;;  %v1869_v16 = vld [vmem:[%s3244_s0 + $0x18] sm:$0xf]  ;;  %v1862_v20 = vor.u32 %v2484_v13, %v1861_v12 }
  0x26   :  { %663 = vmatpush.bf16.msra.mxu1 %v2495_v25  ;;  %v2485_v17 = vld [vmem:[%s3244_s0 + $0x34] sm:$0xf0]  ;;  %v2481_v18 = vld [vmem:[%s3244_s0 + $0x1c] sm:$0xf]  ;;  %v1866_v21 = vor.u32 %v2480_v14, %v1863_v15  ;;  %v2556_v25 = vld [vmem:[%s3247_s3 + $0x30] sm:$0xff] }
  0x27   :  { %677 = vmatpush.bf16.msra.mxu2 %v2503_v26  ;;  %v1871_v19 = vld [vmem:[%s3244_s0 + $0x38] sm:$0xf0]  ;;  %v1870_v22 = vor.u32 %v2485_v17, %v1869_v16  ;;  %v2555_v26 = vld [vmem:[%s3247_s3 + $0x28] sm:$0xff]  ;;  %v2638_v34 = vld [vmem:[%s3246_s2] ss:$0 sm:$0xff] }
  0x28   :  { %691 = vmatpush.bf16.msra.mxu3 %v2511_v27  ;;  %v1874_v23 = vor.u32 %v2481_v18, %v1871_v19  ;;  %v2557_v24 = vld [vmem:[%s3247_s3 + $0x38] sm:$0xff]  ;;  %v2554_v27 = vld [vmem:[%s3247_s3 + $0x20] sm:$0xff] }
  0x29   :  { %650 = vmatpush.bf16.msra.mxu0 %v2486_v28  ;;  %v2553_v28 = vld [vmem:[%s3247_s3 + $0x18] sm:$0xff]  ;;  %v2562_v17 = vld [vmem:[%s3251_s7] sm:$0xff] }
  0x2a   :  { %664 = vmatpush.bf16.msra.mxu1 %v2494_v29  ;;  %v2552_v29 = vld [vmem:[%s3247_s3 + $0x10] sm:$0xff]  ;;  %v2561_v39 = vld [vmem:[%s3249_s5 + $0x18] sm:$0xff]  ;;  %v2640_v19 = vld [vmem:[%s3250_s6] ss:$0 sm:$0xff] }
  0x2b   :  { %678 = vmatpush.bf16.msra.mxu2 %v2502_v30  ;;  %v2567_v18 = vld [vmem:[%s3253_s9 + $0x18] sm:$0xff] }
  0x2c   :  { %692 = vmatpush.bf16.msra.mxu3 %v2510_v31  ;;  %651 = vmatmul.bf16.vlgmr.msra.gmra.mxu0 %v1846_v45  ;;  %v2551_v31 = vld [vmem:[%s3247_s3 + $0x8] sm:$0xff] }
  0x2d   :  { %699 = vmatpush.bf16.msrb.mxu0 %v2525_v32  ;;  %665 = vmatmul.bf16.vlgmr.msra.gmra.mxu1 %v1850_v47 }
  0x2e   :  { %713 = vmatpush.bf16.msrb.mxu1 %v2533_v33  ;;  %679 = vmatmul.bf16.vlgmr.msra.gmra.mxu2 %v1854_v44  ;;  %v2550_v33 = vld [vmem:[%s3247_s3] sm:$0xff] }
  0x2f   :  { %727 = vmatpush.bf16.msrb.mxu2 %v2541_v42  ;;  %693 = vmatmul.bf16.vlgmr.msra.gmra.mxu3 %v1858_v46 }
  0x30   :  { %741 = vmatpush.bf16.msrb.mxu3 %v2549_v43 }
  0x31   :  { %700 = vmatpush.bf16.msrb.mxu0 %v2524_v48 }
  0x32   :  { %714 = vmatpush.bf16.msrb.mxu1 %v2532_v49 }
  0x33   :  { %728 = vmatpush.bf16.msrb.mxu2 %v2540_v50 }
  0x34   :  { %742 = vmatpush.bf16.msrb.mxu3 %v2548_v51 }
  0x35   :  { %701 = vmatpush.bf16.msrb.mxu0 %v2523_v52 }
  0x36   :  { %715 = vmatpush.bf16.msrb.mxu1 %v2531_v53 }
  0x37   :  { %729 = vmatpush.bf16.msrb.mxu2 %v2539_v54 }
  0x38   :  { %743 = vmatpush.bf16.msrb.mxu3 %v2547_v55 }
  0x39   :  { %702 = vmatpush.bf16.msrb.mxu0 %v2522_v56 }
  0x3a   :  { %716 = vmatpush.bf16.msrb.mxu1 %v2530_v57 }
  0x3b   :  { %730 = vmatpush.bf16.msrb.mxu2 %v2538_v58 }
  0x3c   :  { %744 = vmatpush.bf16.msrb.mxu3 %v2546_v59 }
  0x3d   :  { %703 = vmatpush.bf16.msrb.mxu0 %v2521_v60 }
  0x3e   :  { %717 = vmatpush.bf16.msrb.mxu1 %v2529_v61 }
  0x3f   :  { %731 = vmatpush.bf16.msrb.mxu2 %v2537_v62 }
  0x40   :  { %745 = vmatpush.bf16.msrb.mxu3 %v2545_v63 }
  0x41   :  { %704 = vmatpush.bf16.msrb.mxu0 %v2520_v0 }
  0x42   :  { %718 = vmatpush.bf16.msrb.mxu1 %v2528_v1 }
  0x43   :  { %732 = vmatpush.bf16.msrb.mxu2 %v2536_v2 }
  0x44   :  { %746 = vmatpush.bf16.msrb.mxu3 %v2544_v3 }
  0x45   :  { %705 = vmatpush.bf16.msrb.mxu0 %v2519_v4 }
  0x46   :  { %719 = vmatpush.bf16.msrb.mxu1 %v2527_v5  ;;  %v2560_v5 = vld [vmem:[%s3249_s5 + $0x10] sm:$0xff] }
  0x47   :  { %733 = vmatpush.bf16.msrb.mxu2 %v2535_v6  ;;  %v2559_v6 = vld [vmem:[%s3249_s5 + $0x8] sm:$0xff] }
  0x48   :  { %747 = vmatpush.bf16.msrb.mxu3 %v2543_v7  ;;  %v2558_v7 = vld [vmem:[%s3249_s5] sm:$0xff] }
  0x49   :  { %706 = vmatpush.bf16.msrb.mxu0 %v2518_v8  ;;  %v2563_v8 = vld [vmem:[%s3251_s7 + $0x8] sm:$0xff] }
  0x4a   :  { %720 = vmatpush.bf16.msrb.mxu1 %v2526_v9 }
  0x4b   :  { %734 = vmatpush.bf16.msrb.mxu2 %v2534_v10  ;;  %v2639_v10 = vld [vmem:[%s3248_s4] ss:$0 sm:$0xff] }
  0x4c   :  { %748 = vmatpush.bf16.msrb.mxu3 %v2542_v11  ;;  %707 = vmatmul.bf16.vlgmr.msrb.gmra.mxu0 %v1862_v20 }
  0x4d   :  { %721 = vmatmul.bf16.vlgmr.msrb.gmra.mxu1 %v1866_v21  ;;  %826 = vmatpush.bf16.msra.mxu0 %v2557_v24 }
  0x4e   :  { %735 = vmatmul.bf16.vlgmr.msrb.gmra.mxu2 %v1870_v22  ;;  %887 = vmatpush.bf16.msra.mxu1 %v2561_v39  ;;  %v2625_v39 = vld [vmem:[#allocation4 + $0x1cc] sm:$0xf] }
  0x4f   :  { %749 = vmatmul.bf16.vlgmr.msrb.gmra.mxu3 %v1874_v23  ;;  %932 = vmatpush.bf16.msra.mxu2 %v2563_v8  ;;  %v2601_v8 = vld [vmem:[#allocation4 + $0x10c] sm:$0xf] }
  0x50   :  { %986 = vmatpush.bf16.msra.mxu3 %v2567_v18  ;;  %v2312_v18 = vld [vmem:[#allocation4 + $0xc8] sm:$0xf] }
  0x51   :  { %827 = vmatpush.bf16.msra.mxu0 %v2556_v25 }
  0x52   :  { %888 = vmatpush.bf16.msra.mxu1 %v2560_v5  ;;  %v2338_v5 = vld [vmem:[#allocation4 + $0x120] sm:$0xf0] }
  0x53   :  { %933 = vmatpush.bf16.msra.mxu2 %v2562_v17  ;;  %v2306_v17 = vld [vmem:[#allocation4 + $0xe0] sm:$0xf0] }
  0x55   :  { %828 = vmatpush.bf16.msra.mxu0 %v2555_v26 }
  0x56   :  { %889 = vmatpush.bf16.msra.mxu1 %v2559_v6  ;;  %v2344_v6 = vld [vmem:[#allocation4 + $0x108] sm:$0xf] }
  0x59   :  { %829 = vmatpush.bf16.msra.mxu0 %v2554_v27  ;;  %v2566_v27 = vld [vmem:[%s3253_s9 + $0x10] sm:$0xff] }
  0x5a   :  { %890 = vmatpush.bf16.msra.mxu1 %v2558_v7  ;;  %987 = vmatpush.bf16.msra.mxu3 %v2566_v27  ;;  %v2605_v7 = vld [vmem:[#allocation4 + $0x124] sm:$0xf0]  ;;  %v2584_v27 = vld [vmem:[#allocation4 + $0x84] sm:$0xf] }
  0x5d   :  { %830 = vmatpush.bf16.msra.mxu0 %v2553_v28  ;;  %v2565_v28 = vld [vmem:[%s3253_s9 + $0x8] sm:$0xff] }
  0x5e   :  { %988 = vmatpush.bf16.msra.mxu3 %v2565_v28 }
  0x61   :  { %831 = vmatpush.bf16.msra.mxu0 %v2552_v29  ;;  %v2564_v29 = vld [vmem:[%s3253_s9] sm:$0xff] }
  0x62   :  { %989 = vmatpush.bf16.msra.mxu3 %v2564_v29 }
  0x65   :  { %832 = vmatpush.bf16.msra.mxu0 %v2551_v31  ;;  %v2628_v31 = vld [vmem:[#allocation4 + $0x1dc] sm:$0xf0] }
  0x69   :  { %833 = vmatpush.bf16.msra.mxu0 %v2550_v33 }
  0xa9   :  { %v652_v30 = vpop.f32.mrf.mxu0 }
  0xaa   :  { %v666_v32 = vpop.f32.mrf.mxu1  ;;  %v653_v37 = vadd.f32 %v2638_v34, %v652_v30  ;;  %v2432_v30 = vld [vmem:[#allocation4 + $0x1c0] sm:$0xf] }
  0xab   :  { %v2433_v33 = vor.u32 %v2628_v31, %v2432_v30  ;;  %v2274_v30 = vld [vmem:[#allocation4 + $0xa0] sm:$0xf0]  ;;  %v2280_v31 = vld [vmem:[#allocation4 + $0x88] sm:$0xf] }
  0xac   :  { %v667_v41 = vadd.f32 %v666_v32, %v653_v37  ;;  %v2624_v32 = vld [vmem:[#allocation4 + $0x1c4] sm:$0xf] }
  0xad   :  { %1401 = vmatpush.bf16.msrb.mxu1 %v2433_v33  ;;  %v2585_v33 = vld [vmem:[#allocation4 + $0x8c] sm:$0xf] }
  0xb1   :  { %v680_v35 = vpop.f32.mrf.mxu2  ;;  %v654_v38 = vpop.f32.mrf.mxu0 }
  0xb2   :  { %v694_v36 = vpop.f32.mrf.mxu3  ;;  %v668_v40 = vpop.f32.mrf.mxu1  ;;  %v655_v42 = vadd.f32 %v2638_v34, %v654_v38  ;;  %v681_v45 = vadd.f32 %v680_v35, %v667_v41  ;;  %v2434_v34 = vld [vmem:[#allocation4 + $0x1e0] sm:$0xf0]  ;;  %v2440_v35 = vld [vmem:[#allocation4 + $0x1c8] sm:$0xf]  ;;  %v2400_v41 = vld [vmem:[#allocation4 + $0x180] sm:$0xf] }
  0xb3   :  { %v2437_v37 = vor.u32 %v2624_v32, %v2434_v34  ;;  %v2589_v32 = vld [vmem:[#allocation4 + $0xa4] sm:$0xf0]  ;;  %v2282_v34 = vld [vmem:[#allocation4 + $0xa8] sm:$0xf0] }
  0xb4   :  { %v669_v46 = vadd.f32 %v668_v40, %v655_v42  ;;  %v695_v49 = vadd.f32 %v694_v36, %v681_v45  ;;  %v2629_v36 = vld [vmem:[#allocation4 + $0x1e4] sm:$0xf0]  ;;  %v2442_v40 = vld [vmem:[#allocation4 + $0x1e8] sm:$0xf0]  ;;  %v2402_v45 = vld [vmem:[#allocation4 + $0x1a0] sm:$0xf0] }
  0xb5   :  { %v2441_v38 = vor.u32 %v2629_v36, %v2440_v35  ;;  %v2445_v42 = vor.u32 %v2625_v39, %v2442_v40  ;;  %1415 = vmatpush.bf16.msrb.mxu2 %v2437_v37  ;;  %v2641_v35 = vld [vmem:[%s3252_s8] ss:$0 sm:$0xff]  ;;  %v2277_v37 = vor.u32 %v2584_v27, %v2274_v30  ;;  %v2619_v27 = vld [vmem:[#allocation4 + $0x19c] sm:$0xf]  ;;  %v2384_v30 = vld [vmem:[#allocation4 + $0x150] sm:$0xf] }
  0xb6   :  { %v2240_v39 = vld [vmem:[#allocation4 + $0x40] sm:$0xf] }
  0xb7   :  { %1429 = vmatpush.bf16.msrb.mxu3 %v2441_v38  ;;  %1443 = vmatpush.bf16.msrb.mxu0 %v2445_v42  ;;  %v2281_v38 = vor.u32 %v2589_v32, %v2280_v31  ;;  %v2580_v40 = vld [vmem:[#allocation4 + $0x5c] sm:$0xf0]  ;;  %v2285_v42 = vor.u32 %v2585_v33, %v2282_v34  ;;  %v2614_v31 = vld [vmem:[#allocation4 + $0x16c] sm:$0xf0]  ;;  %v2610_v32 = vld [vmem:[#allocation4 + $0x154] sm:$0xf] }
  0xb8   :  { %v2385_v33 = vor.u32 %v2614_v31, %v2384_v30  ;;  %v2386_v34 = vld [vmem:[#allocation4 + $0x170] sm:$0xf0]  ;;  %v2232_v30 = vld [vmem:[#allocation4 + $0x18] sm:$0xf] }
  0xb9   :  { %v682_v43 = vpop.f32.mrf.mxu2  ;;  %v2575_v31 = vld [vmem:[#allocation4 + $0x34] sm:$0xf0] }
  0xba   :  { %v696_v44 = vpop.f32.mrf.mxu3  ;;  %v683_v50 = vadd.f32 %v682_v43, %v669_v46  ;;  %v2620_v43 = vld [vmem:[#allocation4 + $0x19c] sm:$0xf0] }
  0xbb   :  { %v2401_v46 = vor.u32 %v2620_v43, %v2400_v41  ;;  %v2576_v41 = vld [vmem:[#allocation4 + $0x44] sm:$0xf] }
  0xbc   :  { %v697_v54 = vadd.f32 %v696_v44, %v683_v50  ;;  %v2616_v44 = vld [vmem:[#allocation4 + $0x184] sm:$0xf]  ;;  %v2617_v50 = vld [vmem:[#allocation4 + $0x18c] sm:$0xf] }
  0xbd   :  { %1402 = vmatpush.bf16.msrb.mxu1 %v2401_v46  ;;  %v2242_v43 = vld [vmem:[#allocation4 + $0x60] sm:$0xf0]  ;;  %v2577_v46 = vld [vmem:[#allocation4 + $0x4c] sm:$0xf] }
  0xc9   :  { %v708_v47 = vpop.f32.mrf.mxu0 }
  0xca   :  { %v722_v48 = vpop.f32.mrf.mxu1  ;;  %v709_v51 = vadd.f32 %v708_v47, %v695_v49  ;;  %v2405_v47 = vor.u32 %v2616_v44, %v2402_v45  ;;  %v2621_v49 = vld [vmem:[#allocation4 + $0x1a4] sm:$0xf0] }
  0xcb   :  { %v2248_v44 = vld [vmem:[#allocation4 + $0x48] sm:$0xf] }
  0xcc   :  { %v723_v56 = vadd.f32 %v722_v48, %v709_v51  ;;  %v2408_v48 = vld [vmem:[#allocation4 + $0x188] sm:$0xf]  ;;  %1416 = vmatpush.bf16.msrb.mxu2 %v2405_v47  ;;  %v2250_v47 = vld [vmem:[#allocation4 + $0x68] sm:$0xf0] }
  0xcd   :  { %v2409_v51 = vor.u32 %v2621_v49, %v2408_v48  ;;  %v2581_v45 = vld [vmem:[#allocation4 + $0x64] sm:$0xf0]  ;;  %v2241_v48 = vor.u32 %v2580_v40, %v2240_v39  ;;  %v2611_v39 = vld [vmem:[#allocation4 + $0x15c] sm:$0xf] }
  0xce   :  { %v2394_v40 = vld [vmem:[#allocation4 + $0x178] sm:$0xf0] }
  0xcf   :  { %1430 = vmatpush.bf16.msrb.mxu3 %v2409_v51  ;;  %v2249_v51 = vor.u32 %v2581_v45, %v2248_v44  ;;  %v2602_v44 = vld [vmem:[#allocation4 + $0x114] sm:$0xf] }
  0xd1   :  { %v736_v52 = vpop.f32.mrf.mxu2  ;;  %v710_v55 = vpop.f32.mrf.mxu0 }
  0xd2   :  { %v750_v53 = vpop.f32.mrf.mxu3  ;;  %v711_v57 = vadd.f32 %v710_v55, %v697_v54  ;;  %v737_v58 = vadd.f32 %v736_v52, %v723_v56  ;;  %v724_v59 = vpop.f32.mrf.mxu1  ;;  %v2410_v52 = vld [vmem:[#allocation4 + $0x1a8] sm:$0xf0]  ;;  %v2612_v54 = vld [vmem:[#allocation4 + $0x15c] sm:$0xf0]  ;;  %v2608_v56 = vld [vmem:[#allocation4 + $0x144] sm:$0xf] }
  0xd3   :  { %v2413_v55 = vor.u32 %v2617_v50, %v2410_v52  ;;  %v2245_v50 = vor.u32 %v2576_v41, %v2242_v43  ;;  %v2208_v52 = vld [vmem:[#allocation4] sm:$0xf]  ;;  %v2397_v41 = vor.u32 %v2611_v39, %v2394_v40  ;;  %v2606_v43 = vld [vmem:[#allocation4 + $0x12c] sm:$0xf0] }
  0xd4   :  { %v725_v60 = vadd.f32 %v724_v59, %v711_v57  ;;  %v751_v62 = vadd.f32 %v750_v53, %v737_v58  ;;  %v2368_v53 = vld [vmem:[#allocation4 + $0x140] sm:$0xf]  ;;  %v2370_v57 = vld [vmem:[#allocation4 + $0x160] sm:$0xf0]  ;;  %v2376_v58 = vld [vmem:[#allocation4 + $0x148] sm:$0xf] }
  0xd5   :  { %v2369_v59 = vor.u32 %v2612_v54, %v2368_v53  ;;  %1444 = vmatpush.bf16.msrb.mxu0 %v2413_v55  ;;  %v2572_v53 = vld [vmem:[#allocation4 + $0x1c] sm:$0xf0]  ;;  %v2253_v55 = vor.u32 %v2577_v46, %v2250_v47  ;;  %v2354_v46 = vld [vmem:[#allocation4 + $0x130] sm:$0xf0]  ;;  %v2360_v47 = vld [vmem:[#allocation4 + $0x118] sm:$0xf] }
  0xd6   :  { %v755_v2 = vmax.f32 %v751_v62, 0.0  ;;  %v2378_v62 = vld [vmem:[#allocation4 + $0x168] sm:$0xf0]  ;;  %v2642_v39 = vld [vmem:[%s3254_s10] ss:$0 sm:$0xff] }
  0xd7   :  { %1403 = vmatpush.bf16.msrb.mxu1 %v2369_v59 }
  0xd9   :  { %v738_v61 = vpop.f32.mrf.mxu2 }
  0xda   :  { %v739_v63 = vadd.f32 %v738_v61, %v725_v60  ;;  %v752_v0 = vpop.f32.mrf.mxu3  ;;  %v2613_v60 = vld [vmem:[#allocation4 + $0x164] sm:$0xf0]  ;;  %v2609_v61 = vld [vmem:[#allocation4 + $0x14c] sm:$0xf] }
  0xdc   :  { %v753_v1 = vadd.f32 %v752_v0, %v739_v63  ;;  %v2373_v63 = vor.u32 %v2608_v56, %v2370_v57  ;;  %v2377_v0 = vor.u32 %v2613_v60, %v2376_v58  ;;  %v2568_v56 = vld [vmem:[#allocation4 + $0x4] sm:$0xf]  ;;  %v2216_v58 = vld [vmem:[#allocation4 + $0x8] sm:$0xf] }
  0xdd   :  { %v2210_v57 = vld [vmem:[#allocation4 + $0x20] sm:$0xf0]  ;;  %v2573_v60 = vld [vmem:[#allocation4 + $0x24] sm:$0xf0] }
  0xde   :  { %v756_v3 = vmax.f32 %v753_v1, 0.0  ;;  %v2336_v1 = vld [vmem:[#allocation4 + $0x100] sm:$0xf]  ;;  %1417 = vmatpush.bf16.msrb.mxu2 %v2373_v63  ;;  %1431 = vmatpush.bf16.msrb.mxu3 %v2377_v0  ;;  %v2209_v63 = vor.u32 %v2572_v53, %v2208_v52  ;;  %v2362_v52 = vld [vmem:[#allocation4 + $0x138] sm:$0xf0] }
  0xe0   :  { %v757_v4 = vpack.c.bf16 %v756_v3, %v755_v2  ;;  %v2604_v2 = vld [vmem:[#allocation4 + $0x11c] sm:$0xf0]  ;;  %v2600_v3 = vld [vmem:[#allocation4 + $0x104] sm:$0xf] }
  0xe2   :  { %834 = vmatmul.bf16.vlgmr.msra.gmra.mxu0 %v757_v4  ;;  %v2381_v4 = vor.u32 %v2609_v61, %v2378_v62  ;;  %v2569_v61 = vld [vmem:[#allocation4 + $0xc] sm:$0xf] }
  0xe3   :  { %v2218_v62 = vld [vmem:[#allocation4 + $0x28] sm:$0xf0] }
  0xe4   :  { %1445 = vmatpush.bf16.msrb.mxu0 %v2381_v4  ;;  %v2221_v4 = vor.u32 %v2569_v61, %v2218_v62 }
 0x15f   :  { %v835_v9 = vpop.f32.mrf.mxu0 }
 0x160   :  { %v836_v11 = vadd.f32 %v2639_v10, %v835_v9  ;;  %v2346_v9 = vld [vmem:[#allocation4 + $0x128] sm:$0xf0] }
 0x162   :  { %v840_v14 = vmax.f32 %v836_v11, 0.0  ;;  %v2341_v11 = vor.u32 %v2600_v3, %v2338_v5  ;;  %v2217_v3 = vor.u32 %v2573_v60, %v2216_v58  ;;  %v2322_v58 = vld [vmem:[#allocation4 + $0xf0] sm:$0xf0]  ;;  %v2599_v60 = vld [vmem:[#allocation4 + $0xf4] sm:$0xf0] }
 0x164   :  { %1418 = vmatpush.bf16.msrb.mxu2 %v2341_v11  ;;  %v2456_v11 = vld [vmem:[#allocation4 + $0x1d8] sm:$0xf] }
 0x167   :  { %v837_v12 = vpop.f32.mrf.mxu0 }
 0x168   :  { %v838_v13 = vadd.f32 %v2639_v10, %v837_v12  ;;  %v2337_v10 = vor.u32 %v2604_v2, %v2336_v1  ;;  %v2345_v12 = vor.u32 %v2605_v7, %v2344_v6  ;;  %v2213_v2 = vor.u32 %v2568_v56, %v2210_v57  ;;  %v2448_v6 = vld [vmem:[#allocation4 + $0x1d0] sm:$0xf]  ;;  %v2594_v56 = vld [vmem:[#allocation4 + $0xd4] sm:$0xf] }
 0x169   :  { %v2630_v7 = vld [vmem:[#allocation4 + $0x1ec] sm:$0xf0]  ;;  %v2325_v61 = vor.u32 %v2594_v56, %v2322_v58 }
 0x16a   :  { %v841_v15 = vmax.f32 %v838_v13, 0.0  ;;  %v2304_v13 = vld [vmem:[#allocation4 + $0xc0] sm:$0xf]  ;;  %1404 = vmatpush.bf16.msrb.mxu1 %v2337_v10  ;;  %1432 = vmatpush.bf16.msrb.mxu3 %v2345_v12  ;;  %v2450_v10 = vld [vmem:[#allocation4 + $0x1f0] sm:$0xf0] }
 0x16b   :  { %v2631_v12 = vld [vmem:[#allocation4 + $0x1f4] sm:$0xf0] }
 0x16c   :  { %v842_v16 = vpack.c.bf16 %v841_v15, %v840_v14  ;;  %v2596_v14 = vld [vmem:[#allocation4 + $0xdc] sm:$0xf0]  ;;  %v2592_v15 = vld [vmem:[#allocation4 + $0xc4] sm:$0xf] }
 0x16e   :  { %2179 = vmatmul.msk.bf16.vlgmr.msra.gmra.mxu1 %vm879_vm0, %v842_v16  ;;  %v2349_v16 = vor.u32 %v2601_v8, %v2346_v9  ;;  %v2626_v8 = vld [vmem:[#allocation4 + $0x1d4] sm:$0xf]  ;;  %v2449_v9 = vor.u32 %v2630_v7, %v2448_v6 }
 0x170   :  { %1446 = vmatpush.bf16.msrb.mxu0 %v2349_v16  ;;  %v2458_v16 = vld [vmem:[#allocation4 + $0x1f8] sm:$0xf0] }
 0x1eb   :  { %v892_v20 = vpop.f32.mrf.mxu1 }
 0x1ec   :  { %v893_v21 = vadd.f32 %v2640_v19, %v892_v20  ;;  %v2593_v20 = vld [vmem:[#allocation4 + $0xcc] sm:$0xf] }
 0x1ee   :  { %v897_v22 = vmax.f32 %v893_v21, 0.0  ;;  %v2314_v21 = vld [vmem:[#allocation4 + $0xe8] sm:$0xf0] }
 0x1ef   :  { %v2317_v29 = vor.u32 %v2593_v20, %v2314_v21  ;;  %v2618_v20 = vld [vmem:[#allocation4 + $0x194] sm:$0xf] }
 0x1f0   :  { %900 = vst.msk [vmem:[%s3258_s14] sm:$0xff] %vm899_vm1, %v897_v22 }
 0x1f1   :  { %1447 = vmatpush.bf16.msrb.mxu0 %v2317_v29 }
 0x1f3   :  { %v894_v23 = vpop.f32.mrf.mxu1 }
 0x1f4   :  { %v895_v24 = vadd.f32 %v2640_v19, %v894_v23  ;;  %v2597_v19 = vld [vmem:[#allocation4 + $0xe4] sm:$0xf0]  ;;  %v2309_v23 = vor.u32 %v2592_v15, %v2306_v17  ;;  %v2627_v15 = vld [vmem:[#allocation4 + $0x1dc] sm:$0xf] }
 0x1f5   :  { %1448 = vmatpush.bf16.msrb.mxu0 %v2285_v42  ;;  %v2461_v17 = vor.u32 %v2627_v15, %v2458_v16  ;;  %v2352_v42 = vld [vmem:[#allocation4 + $0x110] sm:$0xf]  ;;  %v2578_v16 = vld [vmem:[#allocation4 + $0x54] sm:$0xf] }
 0x1f6   :  { %v898_v25 = vmax.f32 %v895_v24, 0.0  ;;  %v2313_v24 = vor.u32 %v2597_v19, %v2312_v18  ;;  %1419 = vmatpush.bf16.msrb.mxu2 %v2309_v23  ;;  %v2416_v18 = vld [vmem:[#allocation4 + $0x190] sm:$0xf]  ;;  %v2424_v23 = vld [vmem:[#allocation4 + $0x198] sm:$0xf]  ;;  %v2353_v45 = vor.u32 %v2606_v43, %v2352_v42 }
 0x1f7   :  { %v2622_v19 = vld [vmem:[#allocation4 + $0x1ac] sm:$0xf0] }
 0x1f8   :  { %901 = vst.msk [vmem:[%s3258_s14 + $0x8] sm:$0xff] %vm899_vm1, %v898_v25  ;;  %v902_v26 = vpack.c.bf16 %v898_v25, %v897_v22  ;;  %v2305_v22 = vor.u32 %v2596_v14, %v2304_v13  ;;  %v2272_v25 = vld [vmem:[#allocation4 + $0x80] sm:$0xf]  ;;  %1433 = vmatpush.bf16.msrb.mxu3 %v2313_v24  ;;  %v2453_v13 = vor.u32 %v2626_v8, %v2450_v10  ;;  %v2623_v24 = vld [vmem:[#allocation4 + $0x1b4] sm:$0xf0] }
 0x1f9   :  { %1449 = vmatpush.bf16.msrb.mxu0 %v2253_v55  ;;  %v2457_v14 = vor.u32 %v2631_v12, %v2456_v11  ;;  %v2417_v21 = vor.u32 %v2622_v19, %v2416_v18  ;;  %v2598_v55 = vld [vmem:[#allocation4 + $0xec] sm:$0xf0]  ;;  %v2296_v8 = vld [vmem:[#allocation4 + $0x98] sm:$0xf]  ;;  %v2587_v10 = vld [vmem:[#allocation4 + $0x9c] sm:$0xf] }
 0x1fa   :  { %2188 = vmatmul.msk.bf16.vlgmr.msra.gmra.mxu2 %vm899_vm1, %v902_v26  ;;  %v2588_v26 = vld [vmem:[#allocation4 + $0x9c] sm:$0xf0]  ;;  %1405 = vmatpush.bf16.msrb.mxu1 %v2305_v22  ;;  %v2418_v22 = vld [vmem:[#allocation4 + $0x1b0] sm:$0xf0]  ;;  %v2298_v12 = vld [vmem:[#allocation4 + $0xb8] sm:$0xf0] }
 0x1fb   :  { %v2273_v36 = vor.u32 %v2588_v26, %v2272_v25  ;;  %1420 = vmatpush.bf16.msrb.mxu2 %v2277_v37  ;;  %v2421_v25 = vor.u32 %v2618_v20, %v2418_v22  ;;  %v2425_v26 = vor.u32 %v2623_v24, %v2424_v23  ;;  %v2389_v37 = vor.u32 %v2610_v32, %v2386_v34  ;;  %v2264_v18 = vld [vmem:[#allocation4 + $0x58] sm:$0xf]  ;;  %v2266_v22 = vld [vmem:[#allocation4 + $0x78] sm:$0xf0] }
 0x1fc   :  { %1434 = vmatpush.bf16.msrb.mxu3 %v2281_v38  ;;  %v2301_v15 = vor.u32 %v2587_v10, %v2298_v12  ;;  %v2583_v20 = vld [vmem:[#allocation4 + $0x74] sm:$0xf0]  ;;  %v2571_v32 = vld [vmem:[#allocation4 + $0x1c] sm:$0xf] }
 0x1fd   :  { %1450 = vmatpush.bf16.msrb.mxu0 %v2221_v4  ;;  %v2586_v4 = vld [vmem:[#allocation4 + $0x94] sm:$0xf]  ;;  %v2265_v24 = vor.u32 %v2583_v20, %v2264_v18 }
 0x1fe   :  { %1406 = vmatpush.bf16.msrb.mxu1 %v2273_v36  ;;  %v2615_v36 = vld [vmem:[#allocation4 + $0x174] sm:$0xf0] }
 0x1ff   :  { %1421 = vmatpush.bf16.msrb.mxu2 %v2245_v50 }
 0x200   :  { %1435 = vmatpush.bf16.msrb.mxu3 %v2249_v51  ;;  %v2603_v51 = vld [vmem:[#allocation4 + $0x11c] sm:$0xf] }
 0x201   :  { %1499 = vmatpush.bf16.msra.mxu0 %v2461_v17  ;;  %v2365_v53 = vor.u32 %v2603_v51, %v2362_v52  ;;  %v2258_v17 = vld [vmem:[#allocation4 + $0x70] sm:$0xf0] }
 0x202   :  { %1407 = vmatpush.bf16.msrb.mxu1 %v2241_v48  ;;  %v2607_v48 = vld [vmem:[#allocation4 + $0x134] sm:$0xf0]  ;;  %v2261_v23 = vor.u32 %v2578_v16, %v2258_v17 }
 0x203   :  { %1422 = vmatpush.bf16.msrb.mxu2 %v2213_v2  ;;  %v2361_v50 = vor.u32 %v2607_v48, %v2360_v47 }
 0x204   :  { %1436 = vmatpush.bf16.msrb.mxu3 %v2217_v3  ;;  %v2590_v3 = vld [vmem:[#allocation4 + $0xac] sm:$0xf0] }
 0x206   :  { %1408 = vmatpush.bf16.msrb.mxu1 %v2209_v63  ;;  %v2595_v63 = vld [vmem:[#allocation4 + $0xdc] sm:$0xf] }
 0x207   :  { %1471 = vmatpush.bf16.msra.mxu2 %v2453_v13  ;;  %v2256_v13 = vld [vmem:[#allocation4 + $0x50] sm:$0xf] }
 0x20a   :  { %1457 = vmatpush.bf16.msra.mxu1 %v2449_v9  ;;  %v2591_v9 = vld [vmem:[#allocation4 + $0xb4] sm:$0xf0] }
 0x20b   :  { %1472 = vmatpush.bf16.msra.mxu2 %v2421_v25  ;;  %v2297_v11 = vor.u32 %v2591_v9, %v2296_v8  ;;  %v2224_v25 = vld [vmem:[#allocation4 + $0x10] sm:$0xf] }
 0x20e   :  { %1458 = vmatpush.bf16.msra.mxu1 %v2417_v21  ;;  %v2579_v21 = vld [vmem:[#allocation4 + $0x5c] sm:$0xf] }
 0x20f   :  { %1473 = vmatpush.bf16.msra.mxu2 %v2389_v37 }
 0x212   :  { %1459 = vmatpush.bf16.msra.mxu1 %v2385_v33  ;;  %v2234_v33 = vld [vmem:[#allocation4 + $0x38] sm:$0xf0] }
 0x213   :  { %v2237_v37 = vor.u32 %v2571_v32, %v2234_v33 }
 0x216   :  { %1460 = vmatpush.bf16.msra.mxu1 %v2353_v45 }
 0x27d   :  { %v935_v28 = vpop.f32.mrf.mxu2 }
 0x27e   :  { %v936_v49 = vadd.f32 %v2641_v35, %v935_v28  ;;  %v2426_v28 = vld [vmem:[#allocation4 + $0x1b8] sm:$0xf0] }
 0x27f   :  { %v2429_v29 = vor.u32 %v2619_v27, %v2426_v28  ;;  %v2570_v27 = vld [vmem:[#allocation4 + $0x14] sm:$0xf]  ;;  %v2269_v28 = vor.u32 %v2579_v21, %v2266_v22 }
 0x280   :  { %v940_v0 = vmax.f32 %v936_v49, 0.0  ;;  %v2357_v49 = vor.u32 %v2602_v44, %v2354_v46  ;;  %v2974_v46 = vld [vmem:[%s3256_s12] sm:$0xff] }
 0x281   :  { %1500 = vmatpush.bf16.msra.mxu0 %v2429_v29  ;;  %v2226_v29 = vld [vmem:[#allocation4 + $0x30] sm:$0xf0]  ;;  %v1065_v47 = vperm.slane %v2974_v46, 0  ;;  %v1068_v48 = vperm.slane %v2974_v46, 3  ;;  %v1067_v56 = vperm.slane %v2974_v46, 2  ;;  %v1072_v17 = vperm.slane %v2974_v46, 7 }
 0x282   :  { %1474 = vmatpush.bf16.msra.mxu2 %v2357_v49 }
 0x285   :  { %v937_v54 = vpop.f32.mrf.mxu2  ;;  %1501 = vmatpush.bf16.msra.mxu0 %v2397_v41 }
 0x286   :  { %v938_v59 = vadd.f32 %v2641_v35, %v937_v54  ;;  %v2392_v35 = vld [vmem:[#allocation4 + $0x158] sm:$0xf]  ;;  %v2320_v54 = vld [vmem:[#allocation4 + $0xd0] sm:$0xf]  ;;  %1475 = vmatpush.bf16.msra.mxu2 %v2325_v61 }
 0x287   :  { %v2393_v38 = vor.u32 %v2615_v36, %v2392_v35  ;;  %v2321_v57 = vor.u32 %v2598_v55, %v2320_v54  ;;  %v2229_v35 = vor.u32 %v2570_v27, %v2226_v29  ;;  %v2233_v36 = vor.u32 %v2575_v31, %v2232_v30 }
 0x288   :  { %v941_v1 = vmax.f32 %v938_v59, 0.0  ;;  %v2328_v59 = vld [vmem:[#allocation4 + $0xd8] sm:$0xf]  ;;  %v1066_v54 = vperm.slane %v2974_v46, 1  ;;  %v1070_v27 = vperm.slane %v2974_v46, 5 }
 0x289   :  { %1502 = vmatpush.bf16.msra.mxu0 %v2365_v53  ;;  %v2329_v62 = vor.u32 %v2599_v60, %v2328_v59  ;;  %1461 = vmatpush.bf16.msra.mxu1 %v2321_v57 }
 0x28a   :  { %v942_v5 = vpack.c.bf16 %v941_v1, %v940_v0  ;;  %v2330_v0 = vld [vmem:[#allocation4 + $0xf8] sm:$0xf0]  ;;  %v2288_v1 = vld [vmem:[#allocation4 + $0x90] sm:$0xf] }
 0x28b   :  { %v2333_v2 = vor.u32 %v2595_v63, %v2330_v0  ;;  %v2289_v6 = vor.u32 %v2590_v3, %v2288_v1 }
 0x28c   :  { %2205 = vmatmul.msk.bf16.vlgmr.msra.gmra.mxu3 %vm879_vm0, %v942_v5  ;;  %v2290_v5 = vld [vmem:[#allocation4 + $0xb0] sm:$0xf0] }
 0x28d   :  { %1485 = vmatpush.bf16.msra.mxu3 %v2457_v14  ;;  %v2293_v7 = vor.u32 %v2586_v4, %v2290_v5  ;;  %1503 = vmatpush.bf16.msra.mxu0 %v2333_v2  ;;  %v2582_v14 = vld [vmem:[#allocation4 + $0x6c] sm:$0xf0] }
 0x28e   :  { %1462 = vmatpush.bf16.msra.mxu1 %v2289_v6  ;;  %v2257_v19 = vor.u32 %v2582_v14, %v2256_v13 }
 0x28f   :  { %1476 = vmatpush.bf16.msra.mxu2 %v2293_v7 }
 0x291   :  { %1486 = vmatpush.bf16.msra.mxu3 %v2425_v26  ;;  %v2574_v26 = vld [vmem:[#allocation4 + $0x2c] sm:$0xf0]  ;;  %1504 = vmatpush.bf16.msra.mxu0 %v2301_v15 }
 0x292   :  { %1463 = vmatpush.bf16.msra.mxu1 %v2257_v19  ;;  %v2225_v34 = vor.u32 %v2574_v26, %v2224_v25 }
 0x293   :  { %1477 = vmatpush.bf16.msra.mxu2 %v2261_v23 }
 0x295   :  { %1487 = vmatpush.bf16.msra.mxu3 %v2393_v38  ;;  %1505 = vmatpush.bf16.msra.mxu0 %v2269_v28  ;;  %v1071_v28 = vperm.slane %v2974_v46, 6 }
 0x296   :  { %1464 = vmatpush.bf16.msra.mxu1 %v2225_v34 }
 0x297   :  { %1478 = vmatpush.bf16.msra.mxu2 %v2229_v35 }
 0x299   :  { %1488 = vmatpush.bf16.msra.mxu3 %v2361_v50  ;;  %1506 = vmatpush.bf16.msra.mxu0 %v2237_v37 }
 0x29d   :  { %1489 = vmatpush.bf16.msra.mxu3 %v2329_v62 }
 0x2a1   :  { %1490 = vmatpush.bf16.msra.mxu3 %v2297_v11  ;;  %v1069_v11 = vperm.slane %v2974_v46, 4 }
 0x2a5   :  { %1491 = vmatpush.bf16.msra.mxu3 %v2265_v24 }
 0x2a9   :  { %1492 = vmatpush.bf16.msra.mxu3 %v2233_v36 }
 0x30f   :  { %v991_v38 = vpop.f32.mrf.mxu3 }
 0x310   :  { %v992_v40 = vadd.f32 %v2642_v39, %v991_v38 }
 0x312   :  { %v996_v43 = vmax.f32 %v992_v40, 0.0 }
 0x317   :  { %v993_v41 = vpop.f32.mrf.mxu3 }
 0x318   :  { %v994_v42 = vadd.f32 %v2642_v39, %v993_v41 }
 0x31a   :  { %v997_v44 = vmax.f32 %v994_v42, 0.0 }
 0x31c   :  { %v998_v45 = vpack.c.bf16 %v997_v44, %v996_v43 }
 0x31e   :  { %1409 = vmatmul.bf16.vlgmr.msrb.gmra.mxu1 %v998_v45  ;;  %1423 = vmatmul.bf16.vlgmr.msrb.gmra.mxu2 %v998_v45 }
 0x31f   :  { %1437 = vmatmul.bf16.vlgmr.msrb.gmra.mxu3 %v998_v45  ;;  %1451 = vmatmul.bf16.vlgmr.msrb.gmra.mxu0 %v998_v45 }
 0x32e   :  { %1465 = vmatmul.bf16.vlgmr.msra.gmra.mxu1 %v998_v45  ;;  %1479 = vmatmul.bf16.vlgmr.msra.gmra.mxu2 %v998_v45 }
 0x32f   :  { %1493 = vmatmul.bf16.vlgmr.msra.gmra.mxu3 %v998_v45  ;;  %1507 = vmatmul.bf16.vlgmr.msra.gmra.mxu0 %v998_v45 }
 0x39b   :  { %v1410_v49 = vpop.f32.mrf.mxu1 }
 0x39c   :  { %v1411_v50 = vadd.f32 %v1410_v49, %v1065_v47  ;;  %v1452_v51 = vpop.f32.mrf.mxu0 }
 0x39d   :  { %v1453_v52 = vadd.f32 %v1452_v51, %v1068_v48 }
 0x39e   :  { %v2462_v53 = vmul.f32 -1.442695, %v1411_v50 }
 0x39f   :  { %v2465_v55 = vmul.f32 -1.442695, %v1453_v52 }
 0x3a0   :  { %2643 = vpow2.f32 %v2462_v53 }
 0x3a1   :  { %2645 = vpow2.f32 %v2465_v55  ;;  %v1424_v57 = vpop.f32.mrf.mxu2 }
 0x3a2   :  { %v1425_v58 = vadd.f32 %v1424_v57, %v1066_v54  ;;  %v1438_v59 = vpop.f32.mrf.mxu3 }
 0x3a3   :  { %v1439_v60 = vadd.f32 %v1438_v59, %v1067_v56  ;;  %v1412_v61 = vpop.f32.mrf.mxu1 }
 0x3a4   :  { %v2463_v62 = vmul.f32 -1.442695, %v1425_v58  ;;  %v1413_v63 = vadd.f32 %v1412_v61, %v1065_v47  ;;  %v1454_v0 = vpop.f32.mrf.mxu0 }
 0x3a5   :  { %v2464_v1 = vmul.f32 -1.442695, %v1439_v60  ;;  %v1455_v2 = vadd.f32 %v1454_v0, %v1068_v48 }
 0x3a6   :  { %v2644_v3 = vpop.eup %2643  ;;  %2647 = vpow2.f32 %v2463_v62  ;;  %v2470_v4 = vmul.f32 -1.442695, %v1413_v63 }
 0x3a7   :  { %v2646_v5 = vpop.eup %2645  ;;  %v2980_v6 = vadd.f32 1.0, %v2644_v3  ;;  %2649 = vpow2.f32 %v2464_v1  ;;  %v2473_v7 = vmul.f32 -1.442695, %v1455_v2 }
 0x3a8   :  { %v2982_v8 = vadd.f32 1.0, %v2646_v5  ;;  %2651 = vpow2.f32 %v2470_v4 }
 0x3a9   :  { %2653 = vrcp.f32 %v2980_v6  ;;  %v1426_v9 = vpop.f32.mrf.mxu2  ;;  %v1586_v15 = vand.u32 2147483647, %v2980_v6  ;;  %v1588_v16 = vand.u32 2147483648, %v2980_v6  ;;  %vm1582_vm2 = vweird.f32 %v2980_v6 }
 0x3aa   :  { %2655 = vrcp.f32 %v2982_v8  ;;  %v1440_v10 = vpop.f32.mrf.mxu3  ;;  %v1427_v12 = vadd.f32 %v1426_v9, %v1066_v54  ;;  %v1631_v19 = vand.u32 2147483647, %v2982_v8  ;;  %v1633_v20 = vand.u32 2147483648, %v2982_v8 }
 0x3ab   :  { %2657 = vpow2.f32 %v2473_v7  ;;  %v1466_v13 = vpop.f32.mrf.mxu1  ;;  %v1441_v22 = vadd.f32 %v1440_v10, %v1067_v56  ;;  %vm1627_vm3 = vweird.f32 %v2982_v8  ;;  %vm3004_vm4 = vcmp.eq.f32.partialorder %v1586_v15, 8.507059e+37 }
 0x3ac   :  { %v2648_v14 = vpop.eup %2647  ;;  %v1467_v25 = vadd.f32 %v1466_v13, %v1069_v11  ;;  %v1508_v26 = vpop.f32.mrf.mxu0  ;;  %v2471_v30 = vmul.f32 -1.442695, %v1427_v12  ;;  %v1589_v34 = vor.u32 1.1754944e-38, %v1588_v16  ;;  %vm3010_vm5 = vcmp.eq.f32.partialorder %v1631_v19, 8.507059e+37 }
 0x3ad   :  { %v2650_v18 = vpop.eup %2649  ;;  %v2992_v21 = vadd.f32 1.0, %v2648_v14  ;;  %v1634_v38 = vor.u32 1.1754944e-38, %v1633_v20  ;;  %v3014_v39 = vmul.f32 -1.442695, %v1441_v22  ;;  %v1509_v40 = vadd.f32 %v1508_v26, %v1072_v17 }
 0x3ae   :  { %v2652_v23 = vpop.eup %2651  ;;  %v2994_v24 = vadd.f32 1.0, %v2650_v18  ;;  %v3021_v44 = vmul.f32 -1.442695, %v1467_v25 }
 0x3af   :  { %v2654_v29 = vpop.eup %2653  ;;  %2659 = vrcp.f32 %v2992_v21  ;;  %v1601_v42 = vand.u32 2147483647, %v2992_v21  ;;  %v3019_v43 = vadd.f32 1.0, %v2652_v23  ;;  %v1603_v47 = vand.u32 2147483648, %v2992_v21 }
 0x3b0   :  { %v2656_v31 = vpop.eup %2655  ;;  %v1578_v32 = vmul.f32 %v2654_v29, %v2980_v6  ;;  %2661 = vrcp.f32 %v2994_v24  ;;  %vm1583_vm6 = vweird.f32 %v2654_v29  ;;  %v1616_v50 = vand.u32 2147483647, %v2994_v24 }
 0x3b1   :  { %v2658_v35 = vpop.eup %2657  ;;  %v1623_v36 = vmul.f32 %v2656_v31, %v2982_v8  ;;  %2663 = vpow2.f32 %v2471_v30  ;;  %vm1628_vm7 = vweird.f32 %v2656_v31  ;;  %vm1597_vm8 = vweird.f32 %v2992_v21  ;;  %vm1584_vm11 = vmor %vm1582_vm2, %vm1583_vm6  ;;  %v1480_v14 = vpop.f32.mrf.mxu2 }
 0x3b2   :  { %v1579_v41 = vsub.f32 1.0, %v1578_v32  ;;  %v3024_v48 = vadd.f32 1.0, %v2658_v35  ;;  %2665 = vrcp.f32 %v3019_v43  ;;  %vm1612_vm9 = vweird.f32 %v2994_v24  ;;  %vm1629_vm12 = vmor %vm1627_vm3, %vm1628_vm7 }
 0x3b3   :  { %v1624_v45 = vsub.f32 1.0, %v1623_v36  ;;  %vm3031_vm10 = vcmp.eq.f32.partialorder %v1601_v42, 8.507059e+37  ;;  %v1604_v58 = vor.u32 1.1754944e-38, %v1603_v47  ;;  %v1618_v60 = vand.u32 2147483648, %v2994_v24  ;;  %v1468_v33 = vpop.f32.mrf.mxu1 }
 0x3b4   :  { %v1580_v49 = vmul.f32 %v2654_v29, %v1579_v41  ;;  %2667 = vrcp.f32 %v3024_v48  ;;  %vm3042_vm13 = vcmp.eq.f32.partialorder %v1616_v50, 8.507059e+37  ;;  %v2469_v0 = vmul.f32 -1.442695, %v1509_v40 }
 0x3b5   :  { %v2660_v51 = vpop.eup %2659  ;;  %v1625_v52 = vmul.f32 %v2656_v31, %v1624_v45  ;;  %v1706_v5 = vand.u32 2147483647, %v3019_v43  ;;  %v1619_v12 = vor.u32 1.1754944e-38, %v1618_v60  ;;  %vm1702_vm0 = vweird.f32 %v3019_v43 }
 0x3b6   :  { %v2662_v53 = vpop.eup %2661  ;;  %v1581_v54 = vadd.f32 %v2654_v29, %v1580_v49  ;;  %v1593_v55 = vmul.f32 %v2660_v51, %v2992_v21  ;;  %vm1598_vm14 = vweird.f32 %v2660_v51  ;;  %v1708_v18 = vand.u32 2147483648, %v3019_v43  ;;  %v1494_v21 = vpop.f32.mrf.mxu3 }
 0x3b7   :  { %v1626_v57 = vadd.f32 %v2656_v31, %v1625_v52  ;;  %v1608_v59 = vmul.f32 %v2662_v53, %v2994_v24  ;;  %v2664_v1 = vpop.eup %2663  ;;  %vm1613_vm15 = vweird.f32 %v2662_v53  ;;  %vm1599_vm1 = vmor %vm1597_vm8, %vm1598_vm14  ;;  %vm3065_vm2 = vcmp.eq.f32.partialorder %v1706_v5, 8.507059e+37  ;;  %v1510_v49 = vpop.f32.mrf.mxu0 }
 0x3b8   :  { %v1585_v61 = vsel %vm1584_vm11, %v2654_v29, %v1581_v54  ;;  %v1594_v62 = vsub.f32 1.0, %v1593_v55  ;;  %v2666_v6 = vpop.eup %2665  ;;  %v3054_v9 = vadd.f32 1.0, %v2664_v1  ;;  %vm1614_vm3 = vmor %vm1612_vm9, %vm1613_vm15  ;;  %v1751_v26 = vand.u32 2147483647, %v3024_v48 }
 0x3b9   :  { %v1590_v2 = vsel %vm3004_vm4, %v1589_v34, %v1585_v61  ;;  %v1630_v3 = vsel %vm1629_vm12, %v2656_v31, %v1626_v57  ;;  %v1609_v4 = vsub.f32 1.0, %v1608_v59  ;;  %v1698_v13 = vmul.f32 %v2666_v6, %v3019_v43  ;;  %v1482_v56 = vpop.f32.mrf.mxu2 }
 0x3ba   :  { %1817 = vst [vmem:[%s3257_s13] sm:$0xff] %v1590_v2  ;;  %v1635_v7 = vsel %vm3010_vm5, %v1634_v38, %v1630_v3  ;;  %v1595_v8 = vmul.f32 %v2660_v51, %v1594_v62  ;;  %v2668_v15 = vpop.eup %2667  ;;  %2669 = vrcp.f32 %v3054_v9  ;;  %vm1703_vm4 = vweird.f32 %v2666_v6 }
 0x3bb   :  { %1820 = vst [vmem:[%s3257_s13 + $0x18] sm:$0xff] %v1635_v7  ;;  %v1610_v10 = vmul.f32 %v2662_v53, %v1609_v4  ;;  %v1699_v20 = vsub.f32 1.0, %v1698_v13  ;;  %v1743_v23 = vmul.f32 %v2668_v15, %v3024_v48  ;;  %2671 = vpow2.f32 %v3014_v39  ;;  %vm1704_vm6 = vmor %vm1702_vm0, %vm1703_vm4 }
 0x3bc   :  { %v1596_v16 = vadd.f32 %v2660_v51, %v1595_v8  ;;  %vm1748_vm5 = vweird.f32 %v2668_v15  ;;  %v1753_v34 = vand.u32 2147483648, %v3024_v48  ;;  %2673 = vpow2.f32 %v3021_v44 }
 0x3bd   :  { %v1611_v19 = vadd.f32 %v2662_v53, %v1610_v10  ;;  %v1700_v31 = vmul.f32 %v2666_v6, %v1699_v20  ;;  %v1744_v32 = vsub.f32 1.0, %v1743_v23  ;;  %2675 = vpow2.f32 %v2469_v0 }
 0x3be   :  { %v1600_v25 = vsel %vm1599_vm1, %v2660_v51, %v1596_v16  ;;  %v1481_v37 = vadd.f32 %v1480_v14, %v1070_v27  ;;  %v1709_v39 = vor.u32 1.1754944e-38, %v1708_v18  ;;  %vm1747_vm7 = vweird.f32 %v3024_v48 }
 0x3bf   :  { %v1605_v29 = vsel %vm3031_vm10, %v1604_v58, %v1600_v25  ;;  %v1615_v30 = vsel %vm1614_vm3, %v2662_v53, %v1611_v19  ;;  %v1701_v35 = vadd.f32 %v2666_v6, %v1700_v31  ;;  %v1745_v36 = vmul.f32 %v2668_v15, %v1744_v32  ;;  %vm1749_vm9 = vmor %vm1747_vm7, %vm1748_vm5 }
 0x3c0   :  { %1818 = vst [vmem:[%s3257_s13 + $0x8] sm:$0xff] %v1605_v29  ;;  %v1620_v24 = vsel %vm3042_vm13, %v1619_v12, %v1615_v30  ;;  %v2670_v38 = vpop.eup %2669  ;;  %v1495_v40 = vadd.f32 %v1494_v21, %v1071_v28  ;;  %v1469_v41 = vadd.f32 %v1468_v33, %v1069_v11  ;;  %vm3097_vm8 = vcmp.eq.f32.partialorder %v1751_v26, 8.507059e+37 }
 0x3c1   :  { %1819 = vst [vmem:[%s3257_s13 + $0x10] sm:$0xff] %v1620_v24  ;;  %v1705_v42 = vsel %vm1704_vm6, %v2666_v6, %v1701_v35  ;;  %v1746_v44 = vadd.f32 %v2668_v15, %v1745_v36  ;;  %v1713_v47 = vmul.f32 %v2670_v38, %v3054_v9  ;;  %v2672_v43 = vpop.eup %2671  ;;  %v1754_v48 = vor.u32 1.1754944e-38, %v1753_v34 }
 0x3c2   :  { %v1710_v50 = vsel %vm3065_vm2, %v1709_v39, %v1705_v42  ;;  %v2467_v51 = vmul.f32 -1.442695, %v1481_v37  ;;  %v2468_v52 = vmul.f32 -1.442695, %v1495_v40  ;;  %v3108_v54 = vadd.f32 1.0, %v2672_v43  ;;  %v2674_v57 = vpop.eup %2673 }
 0x3c3   :  { %1825 = vst [vmem:[%s3257_s13 + $0x40] sm:$0xff] %v1710_v50  ;;  %v1750_v11 = vsel %vm1749_vm9, %v2668_v15, %v1746_v44  ;;  %v1714_v53 = vsub.f32 1.0, %v1713_v47  ;;  %v2474_v55 = vmul.f32 -1.442695, %v1469_v41  ;;  %v1723_v59 = vand.u32 2147483648, %v3054_v9  ;;  %v2676_v61 = vpop.eup %2675 }
 0x3c4   :  { %v1755_v58 = vsel %vm3097_vm8, %v1754_v48, %v1750_v11  ;;  %2677 = vpow2.f32 %v2467_v51  ;;  %v1511_v60 = vadd.f32 %v1510_v49, %v1072_v17  ;;  %vm1718_vm10 = vweird.f32 %v2670_v38  ;;  %v1496_v17 = vpop.f32.mrf.mxu3 }
 0x3c5   :  { %1828 = vst [vmem:[%s3257_s13 + $0x58] sm:$0xff] %v1755_v58  ;;  %v1715_v62 = vmul.f32 %v2670_v38, %v1714_v53  ;;  %v1721_v63 = vand.u32 2147483647, %v3054_v9  ;;  %2679 = vrcp.f32 %v3108_v54  ;;  %v3120_v0 = vadd.f32 1.0, %v2674_v57 }
 0x3c6   :  { %v3122_v1 = vadd.f32 1.0, %v2676_v61  ;;  %2681 = vpow2.f32 %v2468_v52  ;;  %v1483_v2 = vadd.f32 %v1482_v56, %v1070_v27  ;;  %vm1717_vm11 = vweird.f32 %v3054_v9 }
 0x3c7   :  { %v1716_v3 = vadd.f32 %v2670_v38, %v1715_v62  ;;  %2683 = vpow2.f32 %v2474_v55  ;;  %vm1719_vm12 = vmor %vm1717_vm11, %vm1718_vm10  ;;  %v1724_v4 = vor.u32 1.1754944e-38, %v1723_v59  ;;  %v1736_v5 = vand.u32 2147483647, %v3108_v54 }
 0x3c8   :  { %2685 = vrcp.f32 %v3120_v0  ;;  %v2477_v6 = vmul.f32 -1.442695, %v1511_v60  ;;  %vm1722_vm13 = vcmp.eq.f32.partialorder %v1721_v63, 8.507059e+37  ;;  %v1497_v8 = vadd.f32 %v1496_v17, %v1071_v28 }
 0x3c9   :  { %v1720_v7 = vsel %vm1719_vm12, %v2670_v38, %v1716_v3  ;;  %2687 = vrcp.f32 %v3122_v1  ;;  %v2475_v12 = vmul.f32 -1.442695, %v1483_v2  ;;  %v1738_v9 = vand.u32 2147483648, %v3108_v54 }
 0x3ca   :  { %v2678_v27 = vpop.eup %2677  ;;  %v1725_v10 = vsel %vm1722_vm13, %v1724_v4, %v1720_v7  ;;  %vm1732_vm14 = vweird.f32 %v3108_v54  ;;  %vm3140_vm15 = vcmp.eq.f32.partialorder %v1736_v5, 8.507059e+37  ;;  %2689 = vpow2.f32 %v2477_v6 }
 0x3cb   :  { %v2680_v13 = vpop.eup %2679  ;;  %1826 = vst [vmem:[%s3257_s13 + $0x48] sm:$0xff] %v1725_v10  ;;  %v3136_v14 = vadd.f32 1.0, %v2678_v27  ;;  %v1646_v18 = vand.u32 2147483647, %v3120_v0  ;;  %v1648_v19 = vand.u32 2147483648, %v3120_v0  ;;  %v1739_v29 = vor.u32 1.1754944e-38, %v1738_v9 }
 0x3cc   :  { %v2682_v15 = vpop.eup %2681  ;;  %v1728_v16 = vmul.f32 %v2680_v13, %v3108_v54  ;;  %v3147_v20 = vmul.f32 -1.442695, %v1497_v8  ;;  %v1691_v31 = vand.u32 2147483647, %v3122_v1  ;;  %v1693_v32 = vand.u32 2147483648, %v3122_v1 }
 0x3cd   :  { %v2684_v28 = vpop.eup %2683  ;;  %2691 = vrcp.f32 %v3136_v14  ;;  %v3149_v25 = vadd.f32 1.0, %v2682_v15  ;;  %vm1733_vm0 = vweird.f32 %v2680_v13  ;;  %vm1642_vm1 = vweird.f32 %v3120_v0 }
 0x3ce   :  { %v2686_v22 = vpop.eup %2685  ;;  %v1729_v23 = vsub.f32 1.0, %v1728_v16  ;;  %v3151_v26 = vadd.f32 1.0, %v2684_v28  ;;  %2693 = vpow2.f32 %v2475_v12  ;;  %vm3159_vm2 = vcmp.eq.f32.partialorder %v1646_v18, 8.507059e+37  ;;  %vm1734_vm4 = vmor %vm1732_vm14, %vm1733_vm0 }
 0x3cf   :  { %v2688_v21 = vpop.eup %2687  ;;  %v1638_v30 = vmul.f32 %v2686_v22, %v3120_v0  ;;  %2695 = vrcp.f32 %v3149_v25  ;;  %vm1687_vm3 = vweird.f32 %v3122_v1  ;;  %v1649_v38 = vor.u32 1.1754944e-38, %v1648_v19 }
 0x3d0   :  { %v1730_v33 = vmul.f32 %v2680_v13, %v1729_v23  ;;  %v1683_v24 = vmul.f32 %v2688_v21, %v3122_v1  ;;  %v2690_v36 = vpop.eup %2689  ;;  %2697 = vrcp.f32 %v3151_v26  ;;  %vm1643_vm5 = vweird.f32 %v2686_v22 }
 0x3d1   :  { %v1639_v34 = vsub.f32 1.0, %v1638_v30  ;;  %vm3167_vm6 = vcmp.eq.f32.partialorder %v1691_v31, 8.507059e+37  ;;  %v1694_v44 = vor.u32 1.1754944e-38, %v1693_v32  ;;  %vm1688_vm7 = vweird.f32 %v2688_v21  ;;  %vm1644_vm9 = vmor %vm1642_vm1, %vm1643_vm5 }
 0x3d2   :  { %v1731_v37 = vadd.f32 %v2680_v13, %v1730_v33  ;;  %v1684_v39 = vsub.f32 1.0, %v1683_v24  ;;  %vm1657_vm8 = vweird.f32 %v3136_v14  ;;  %v1661_v51 = vand.u32 2147483647, %v3136_v14  ;;  %vm1689_vm10 = vmor %vm1687_vm3, %vm1688_vm7 }
 0x3d3   :  { %v2692_v40 = vpop.eup %2691  ;;  %v1640_v41 = vmul.f32 %v2686_v22, %v1639_v34  ;;  %v1663_v54 = vand.u32 2147483648, %v3136_v14  ;;  %v3182_v55 = vadd.f32 1.0, %v2690_v36  ;;  %v1676_v4 = vand.u32 2147483647, %v3149_v25 }
 0x3d4   :  { %v2694_v45 = vpop.eup %2693  ;;  %v1735_v47 = vsel %vm1734_vm4, %v2680_v13, %v1731_v37  ;;  %v1685_v49 = vmul.f32 %v2688_v21, %v1684_v39  ;;  %v1653_v43 = vmul.f32 %v2692_v40, %v3136_v14  ;;  %vm1658_vm11 = vweird.f32 %v2692_v40 }
 0x3d5   :  { %v1740_v50 = vsel %vm3140_vm15, %v1739_v29, %v1735_v47  ;;  %v1641_v48 = vadd.f32 %v2686_v22, %v1640_v41  ;;  %v2696_v52 = vpop.eup %2695  ;;  %v3187_v58 = vadd.f32 1.0, %v2694_v45  ;;  %2699 = vrcp.f32 %v3182_v55  ;;  %vm1659_vm13 = vmor %vm1657_vm8, %vm1658_vm11 }
 0x3d6   :  { %1827 = vst [vmem:[%s3257_s13 + $0x50] sm:$0xff] %v1740_v50  ;;  %v1686_v11 = vadd.f32 %v2688_v21, %v1685_v49  ;;  %v1654_v53 = vsub.f32 1.0, %v1653_v43  ;;  %v1668_v57 = vmul.f32 %v2696_v52, %v3149_v25  ;;  %v2698_v59 = vpop.eup %2697  ;;  %vm3197_vm12 = vcmp.eq.f32.partialorder %v1661_v51, 8.507059e+37 }
 0x3d7   :  { %v1645_v56 = vsel %vm1644_vm9, %v2686_v22, %v1641_v48  ;;  %v1758_v2 = vmul.f32 %v2698_v59, %v3151_v26  ;;  %v1664_v3 = vor.u32 1.1754944e-38, %v1663_v54  ;;  %v1678_v5 = vand.u32 2147483648, %v3149_v25 }
 0x3d8   :  { %v1650_v60 = vsel %vm3159_vm2, %v1649_v38, %v1645_v56  ;;  %v1690_v61 = vsel %vm1689_vm10, %v2688_v21, %v1686_v11  ;;  %v1655_v62 = vmul.f32 %v2692_v40, %v1654_v53  ;;  %v1669_v1 = vsub.f32 1.0, %v1668_v57 }
 0x3d9   :  { %1821 = vst [vmem:[%s3257_s13 + $0x20] sm:$0xff] %v1650_v60  ;;  %v1695_v63 = vsel %vm3167_vm6, %v1694_v44, %v1690_v61  ;;  %vm1673_vm14 = vweird.f32 %v2696_v52  ;;  %v1759_v7 = vsub.f32 1.0, %v1758_v2  ;;  %2701 = vrcp.f32 %v3187_v58 }
 0x3da   :  { %1824 = vst [vmem:[%s3257_s13 + $0x38] sm:$0xff] %v1695_v63  ;;  %v1656_v17 = vadd.f32 %v2692_v40, %v1655_v62  ;;  %v1670_v6 = vmul.f32 %v2696_v52, %v1669_v1  ;;  %vm1672_vm15 = vweird.f32 %v3149_v25  ;;  %v1766_v27 = vand.u32 2147483647, %v3151_v26 }
 0x3db   :  { %v1768_v10 = vand.u32 2147483648, %v3151_v26  ;;  %v1760_v9 = vmul.f32 %v2698_v59, %v1759_v7  ;;  %vm1763_vm0 = vweird.f32 %v2698_v59  ;;  %v2700_v14 = vpop.eup %2699  ;;  %vm1674_vm1 = vmor %vm1672_vm15, %vm1673_vm14  ;;  %v1679_v15 = vor.u32 1.1754944e-38, %v1678_v5 }
 0x3dc   :  { %v1660_v8 = vsel %vm1659_vm13, %v2692_v40, %v1656_v17  ;;  %v1671_v13 = vadd.f32 %v2696_v52, %v1670_v6  ;;  %vm1762_vm2 = vweird.f32 %v3151_v26  ;;  %2703 = vpow2.f32 %v3147_v20 }
 0x3dd   :  { %v1665_v12 = vsel %vm3197_vm12, %v1664_v3, %v1660_v8  ;;  %vm1677_vm3 = vcmp.eq.f32.partialorder %v1676_v4, 8.507059e+37  ;;  %v1761_v46 = vadd.f32 %v2698_v59, %v1760_v9  ;;  %v1803_v28 = vmul.f32 %v2700_v14, %v3182_v55  ;;  %vm1764_vm4 = vmor %vm1762_vm2, %vm1763_vm0 }
 0x3de   :  { %1822 = vst [vmem:[%s3257_s13 + $0x28] sm:$0xff] %v1665_v12  ;;  %v1675_v16 = vsel %vm1674_vm1, %v2696_v52, %v1671_v13  ;;  %v1769_v19 = vor.u32 1.1754944e-38, %v1768_v10  ;;  %vm1767_vm5 = vcmp.eq.f32.partialorder %v1766_v27, 8.507059e+37  ;;  %v1813_v26 = vand.u32 2147483648, %v3182_v55 }
 0x3df   :  { %v1680_v18 = vsel %vm1677_vm3, %v1679_v15, %v1675_v16  ;;  %v2702_v22 = vpop.eup %2701  ;;  %v1765_v23 = vsel %vm1764_vm4, %v2698_v59, %v1761_v46  ;;  %v1804_v25 = vsub.f32 1.0, %v1803_v28  ;;  %vm1808_vm6 = vweird.f32 %v2700_v14 }
 0x3e0   :  { %1823 = vst [vmem:[%s3257_s13 + $0x30] sm:$0xff] %v1680_v18  ;;  %v1770_v21 = vsel %vm1767_vm5, %v1769_v19, %v1765_v23  ;;  %v1773_v20 = vmul.f32 %v2702_v22, %v3187_v58  ;;  %v1811_v30 = vand.u32 2147483647, %v3182_v55  ;;  %vm1807_vm7 = vweird.f32 %v3182_v55 }
 0x3e1   :  { %1829 = vst [vmem:[%s3257_s13 + $0x60] sm:$0xff] %v1770_v21  ;;  %v1805_v29 = vmul.f32 %v2700_v14, %v1804_v25  ;;  %v1783_v24 = vand.u32 2147483648, %v3187_v58  ;;  %vm1809_vm8 = vmor %vm1807_vm7, %vm1808_vm6  ;;  %v1814_v35 = vor.u32 1.1754944e-38, %v1813_v26  ;;  %vm1778_vm9 = vweird.f32 %v2702_v22 }
 0x3e2   :  { %v2704_v31 = vpop.eup %2703  ;;  %v1774_v32 = vsub.f32 1.0, %v1773_v20  ;;  %v1781_v37 = vand.u32 2147483647, %v3187_v58  ;;  %vm1812_vm10 = vcmp.eq.f32.partialorder %v1811_v30, 8.507059e+37  ;;  %vm1777_vm11 = vweird.f32 %v3187_v58 }
 0x3e3   :  { %v1806_v33 = vadd.f32 %v2700_v14, %v1805_v29  ;;  %v1575_v34 = vadd.f32 1.0, %v2704_v31  ;;  %vm1779_vm12 = vmor %vm1777_vm11, %vm1778_vm9  ;;  %v1784_v41 = vor.u32 1.1754944e-38, %v1783_v24 }
 0x3e4   :  { %v1775_v36 = vmul.f32 %v2702_v22, %v1774_v32  ;;  %vm1782_vm13 = vcmp.eq.f32.partialorder %v1781_v37, 8.507059e+37 }
 0x3e5   :  { %v1810_v38 = vsel %vm1809_vm8, %v2700_v14, %v1806_v33  ;;  %2705 = vrcp.f32 %v1575_v34  ;;  %v1798_v43 = vand.u32 2147483648, %v1575_v34  ;;  %v1796_v48 = vand.u32 2147483647, %v1575_v34 }
 0x3e6   :  { %v1815_v39 = vsel %vm1812_vm10, %v1814_v35, %v1810_v38  ;;  %v1776_v40 = vadd.f32 %v2702_v22, %v1775_v36  ;;  %vm1792_vm15 = vweird.f32 %v1575_v34 }
 0x3e7   :  { %1832 = vst [vmem:[%s3257_s13 + $0x78] sm:$0xff] %v1815_v39  ;;  %v1799_v52 = vor.u32 1.1754944e-38, %v1798_v43  ;;  %vm1797_vm1 = vcmp.eq.f32.partialorder %v1796_v48, 8.507059e+37 }
 0x3e8   :  { %v1780_v42 = vsel %vm1779_vm12, %v2702_v22, %v1776_v40 }
 0x3e9   :  { %v1785_v44 = vsel %vm1782_vm13, %v1784_v41, %v1780_v42 }
 0x3ea   :  { %1830 = vst [vmem:[%s3257_s13 + $0x68] sm:$0xff] %v1785_v44 }
 0x3eb   :  { %v2706_v45 = vpop.eup %2705 }
 0x3ec   :  { %v1788_v47 = vmul.f32 %v2706_v45, %v1575_v34  ;;  %vm1793_vm14 = vweird.f32 %v2706_v45 }
 0x3ed   :  { %vm1794_vm0 = vmor %vm1792_vm15, %vm1793_vm14 }
 0x3ee   :  { %v1789_v49 = vsub.f32 1.0, %v1788_v47 }
 0x3f0   :  { %v1790_v50 = vmul.f32 %v2706_v45, %v1789_v49 }
 0x3f2   :  { %v1791_v51 = vadd.f32 %v2706_v45, %v1790_v50 }
 0x3f4   :  { %v1795_v11 = vsel %vm1794_vm0, %v2706_v45, %v1791_v51 }
 0x3f5   :  { %v1800_v53 = vsel %vm1797_vm1, %v1799_v52, %v1795_v11 }
 0x3f6   :  { %1831 = vst [vmem:[%s3257_s13 + $0x70] sm:$0xff] %v1800_v53 }
 0x3f7   :  { %1841 = vsyncpa [#allocation3], 1 }
 0x3f8   :  { %1842 = vsyncpa [#allocation5], 1 }

</bundles_post_ra>
